<compile_context>
chip_gen: v5e
topology: v5e:2x2
jax: 0.10.0
libtpu: 0.0.40
codegen_flags: <defaults>
</compile_context>

<pallas_src>
import math

import jax
import jax.numpy as jnp
from jax import lax
from jax.experimental import pallas as pl
from jax.experimental.pallas import tpu as pltpu

# ---- small synthetic config (d_model=32, n_heads=4, mlp_ratio=4, seq=8, batch=2) ----
B, S, D, H = 2, 8, 32, 4
DH = D // H
MLP_RATIO = 4
D_HID = MLP_RATIO * D
EPS = 1e-5                     # nn.LayerNorm default
NEG = -1e30                    # additive mask value (stands in for -inf, NaN-safe)
SCALE = 1.0 / math.sqrt(DH)
INV_SQRT2 = 1.0 / math.sqrt(2.0)

# packed-weight lane offsets inside the (D, 288) weight buffer
OFF_WUP = 0                    # [  0:128)  W_up   (D, 4D)
OFF_WQKV = D_HID               # [128:224)  W_qkv  (D, 3D)
OFF_WO = D_HID + 3 * D + D     # [256:288)  W_out  (D, D)   (32-lane pad before it)
W1_WIDTH = OFF_WO + D          # 288


def _layernorm(x, gamma, beta):
    mu = jnp.mean(x, axis=-1, keepdims=True)
    var = jnp.mean((x - mu) ** 2, axis=-1, keepdims=True)
    return (x - mu) * lax.rsqrt(var + EPS) * gamma + beta


def gpt_block_kernel(x_ref, kpm_ref, w1_ref, wdown_ref, vec_ref, out_ref):
    x = x_ref[...]                              # (B*S, D)  all tokens at once
    keep = kpm_ref[...]                         # (B, S)    1.0 = attend, 0.0 = pad

    # ---- unpack weights / vectors (static, vreg-aligned slices) ----
    wup = w1_ref[:, OFF_WUP:OFF_WUP + D_HID]            # (D, 4D)
    wqkv = w1_ref[:, OFF_WQKV:OFF_WQKV + 3 * D]         # (D, 3D)
    wo = w1_ref[:, OFF_WO:OFF_WO + D]                    # (D, D)
    wdown = wdown_ref[...]                               # (4D, D)

    bup = vec_ref[0:1, :]                                # (1, 4D)  (full 128 lanes)
    bqkv = vec_ref[1:2, 0:3 * D]                         # (1, 3D)
    ln1_g = vec_ref[2:3, 0:D]
    ln1_b = vec_ref[3:4, 0:D]
    ln2_g = vec_ref[4:5, 0:D]
    ln2_b = vec_ref[5:6, 0:D]
    bo = vec_ref[6:7, 0:D]
    bdown = vec_ref[7:8, 0:D]

    # ---- ln_1 + QKV projection for all B*S tokens in one matmul ----
    a = _layernorm(x, ln1_g, ln1_b)
    qkv = jnp.dot(a, wqkv, preferred_element_type=jnp.float32) + bqkv   # (B*S, 3D)

    # ---- head-batched causal self-attention (batch folded into head axis) ----
    n_bh = B * H
    q3 = qkv[:, 0:D].reshape(B, S, H, DH).transpose(0, 2, 1, 3).reshape(n_bh, S, DH)
    k3 = qkv[:, D:2 * D].reshape(B, S, H, DH).transpose(0, 2, 1, 3).reshape(n_bh, S, DH)
    v3 = qkv[:, 2 * D:3 * D].reshape(B, S, H, DH).transpose(0, 2, 1, 3).reshape(n_bh, S, DH)

    # additive bias: causal (triu, diagonal=1) + key-padding, built once per call
    row = lax.broadcasted_iota(jnp.int32, (S, S), 0)
    col = lax.broadcasted_iota(jnp.int32, (S, S), 1)
    causal_bias = jnp.where(col > row, NEG, 0.0)                        # (S, S)
    pad_bias = jnp.where(keep > 0.5, 0.0, NEG)                          # (B, S)
    bias = causal_bias[None, None, :, :] + pad_bias[:, None, None, :]   # (B, 1, S, S)
    bias = jnp.broadcast_to(bias, (B, H, S, S)).reshape(n_bh, S, S)

    # scores / softmax / context: last-dim contractions, no explicit transposes
    s = jnp.einsum('nqd,nkd->nqk', q3, k3,
                   preferred_element_type=jnp.float32) * SCALE + bias   # (B*H, S, S)
    m = jnp.max(s, axis=-1, keepdims=True)
    e = jnp.exp(s - m)
    p = e / jnp.sum(e, axis=-1, keepdims=True)          # attn_pdrop: eval -> no-op
    ctx = jnp.einsum('nqk,nkd->nqd', p, v3,
                     preferred_element_type=jnp.float32)                # (B*H, S, DH)
    ctx = ctx.reshape(B, H, S, DH).transpose(0, 2, 1, 3).reshape(B * S, D)

    attn_out = jnp.dot(ctx, wo, preferred_element_type=jnp.float32) + bo

    # resid_attn_dropout is identity in eval mode
    x1 = x + attn_out

    # ---- ln_2 + MLP (up -> exact GELU -> down) over all tokens ----
    m2 = _layernorm(x1, ln2_g, ln2_b)
    hu = jnp.dot(m2, wup, preferred_element_type=jnp.float32) + bup
    hu = 0.5 * hu * (1.0 + lax.erf(hu * INV_SQRT2))     # nn.GELU(approximate='none')
    n_mlp = jnp.dot(hu, wdown, preferred_element_type=jnp.float32) + bdown

    # resid_mlp_dropout is identity in eval mode
    out_ref[...] = x1 + n_mlp


def _pack_params(params):
    """Pack 12 param tensors into 3 DMA-friendly buffers (layout plumbing only)."""
    (ln1_g, ln1_b, wqkv, bqkv, wo, bo, ln2_g, ln2_b, wup, bup, wdown, bdown) = params
    # weights: lane-concatenate so every slice starts at a 128-lane boundary
    w1 = jnp.concatenate(
        [wup, wqkv, jnp.zeros((D, OFF_WO - (OFF_WQKV + 3 * D)), jnp.float32), wo],
        axis=1)                                                     # (D, 288)

    def pad_row(v):
        return jnp.pad(v, ((0, 0), (0, 128 - v.shape[1])))

    vecs = jnp.concatenate(
        [pad_row(bup), pad_row(bqkv), pad_row(ln1_g), pad_row(ln1_b),
         pad_row(ln2_g), pad_row(ln2_b), pad_row(bo), pad_row(bdown)],
        axis=0)                                                     # (8, 128) = one tile
    return w1, wdown, vecs


def gpt_block(x, kpm, params):
    # Flatten tokens wrapper-side: whole problem fits in VMEM, single invocation,
    # NO grid (no software pipeline, no double buffering).
    x2 = x.reshape(B * S, D)
    kpm2 = kpm.reshape(B, S)
    w1, wdown, vecs = _pack_params(params)

    vmem = lambda: pl.BlockSpec(memory_space=pltpu.MemorySpace.VMEM)
    out = pl.pallas_call(
        gpt_block_kernel,
        out_shape=jax.ShapeDtypeStruct((B * S, D), jnp.float32),
        in_specs=[vmem() for _ in range(5)],
        out_specs=vmem(),
    )(x2, kpm2, w1, wdown, vecs)
    return out.reshape(B, S, D)


# ---- pure-JAX reference (same math, used only for a sanity check in __main__) ----
def gpt_block_ref(x, kpm, params):
    (ln1_g, ln1_b, wqkv, bqkv, wo, bo, ln2_g, ln2_b, wup, bup, wdown, bdown) = params

    def ln(v, g, b):
        mu = jnp.mean(v, axis=-1, keepdims=True)
        var = jnp.mean((v - mu) ** 2, axis=-1, keepdims=True)
        return (v - mu) * lax.rsqrt(var + EPS) * g + b

    a = ln(x, ln1_g, ln1_b)                                   # (B,S,D)
    qkv = a @ wqkv + bqkv                                     # (B,S,3D)
    q, k, v = qkv[..., :D], qkv[..., D:2 * D], qkv[..., 2 * D:]
    q = q.reshape(B, S, H, DH).transpose(0, 2, 1, 3)
    k = k.reshape(B, S, H, DH).transpose(0, 2, 1, 3)
    v = v.reshape(B, S, H, DH).transpose(0, 2, 1, 3)
    row = lax.broadcasted_iota(jnp.int32, (S, S), 0)
    col = lax.broadcasted_iota(jnp.int32, (S, S), 1)
    bias = jnp.where(col > row, NEG, 0.0)[None, None] + \
        jnp.where(kpm.reshape(B, 1, 1, S) > 0.5, 0.0, NEG)
    s = jnp.einsum('bhqd,bhkd->bhqk', q, k) * SCALE + bias
    p = jax.nn.softmax(s, axis=-1)
    ctx = jnp.einsum('bhqk,bhkd->bhqd', p, v).transpose(0, 2, 1, 3).reshape(B, S, D)
    x1 = x + (ctx @ wo + bo)
    m2 = ln(x1, ln2_g, ln2_b)
    hu = m2 @ wup + bup
    hu = 0.5 * hu * (1.0 + lax.erf(hu * INV_SQRT2))
    return x1 + (hu @ wdown + bdown)


def init_params(key):
    ks = jax.random.split(key, 8)
    scale = 0.02
    ln1_g = jnp.ones((1, D), jnp.float32)
    ln1_b = jnp.zeros((1, D), jnp.float32)
    wqkv = scale * jax.random.normal(ks[0], (D, 3 * D), jnp.float32)   # stored (in, out) = W.T
    bqkv = scale * jax.random.normal(ks[1], (1, 3 * D), jnp.float32)
    wo = scale * jax.random.normal(ks[2], (D, D), jnp.float32)
    bo = scale * jax.random.normal(ks[3], (1, D), jnp.float32)
    ln2_g = jnp.ones((1, D), jnp.float32)
    ln2_b = jnp.zeros((1, D), jnp.float32)
    wup = scale * jax.random.normal(ks[4], (D, D_HID), jnp.float32)
    bup = scale * jax.random.normal(ks[5], (1, D_HID), jnp.float32)
    wdown = scale * jax.random.normal(ks[6], (D_HID, D), jnp.float32)
    bdown = scale * jax.random.normal(ks[7], (1, D), jnp.float32)
    return (ln1_g, ln1_b, wqkv, bqkv, wo, bo, ln2_g, ln2_b, wup, bup, wdown, bdown)


if __name__ == "__main__":
    key = jax.random.PRNGKey(0)
    k_x, k_p = jax.random.split(key)
    x = jax.random.normal(k_x, (B, S, D), jnp.float32)
    # key_padding_mask: 1.0 means "this token is valid" (module passes ~mask to MHA)
    kpm = jnp.ones((B, 1, S), jnp.float32)
    params = init_params(k_p)

    y = gpt_block(x, kpm, params)
    jax.block_until_ready(y)
    assert y.shape == (B, S, D)

    y_ref = gpt_block_ref(x, kpm, params)
    assert jnp.allclose(y, y_ref, atol=1e-3, rtol=1e-3), float(jnp.max(jnp.abs(y - y_ref)))
    print("KERNEL_OK")
</pallas_src>

<mosaic_0001>
module attributes {stable_mosaic.version = 11 : i64} {
  func.func @gpt_block_kernel(%arg0: memref<16x32xf32, #tpu.memory_space<vmem>>, %arg1: memref<2x8xf32, #tpu.memory_space<vmem>>, %arg2: memref<32x288xf32, #tpu.memory_space<vmem>>, %arg3: memref<128x32xf32, #tpu.memory_space<vmem>>, %arg4: memref<8x128xf32, #tpu.memory_space<vmem>>, %arg5: memref<16x32xf32, #tpu.memory_space<vmem>>) attributes {dimension_semantics = [], scalar_prefetch = 0 : i64, scratch_operands = 0 : i64, tpu.core_type = #tpu.core_type<tc>} {
    %c0 = arith.constant 0 : index
    %c0_0 = arith.constant 0 : index
    %0 = vector.load %arg0[%c0, %c0_0] : memref<16x32xf32, #tpu.memory_space<vmem>>, vector<16x32xf32>
    %c0_1 = arith.constant 0 : index
    %c0_2 = arith.constant 0 : index
    %1 = vector.load %arg1[%c0_1, %c0_2] : memref<2x8xf32, #tpu.memory_space<vmem>>, vector<2x8xf32>
    %c0_3 = arith.constant 0 : index
    %c0_4 = arith.constant 0 : index
    %2 = vector.load %arg2[%c0_3, %c0_4] : memref<32x288xf32, #tpu.memory_space<vmem>>, vector<32x128xf32>
    %c0_5 = arith.constant 0 : index
    %c128 = arith.constant 128 : index
    %3 = vector.load %arg2[%c0_5, %c128] : memref<32x288xf32, #tpu.memory_space<vmem>>, vector<32x96xf32>
    %c0_6 = arith.constant 0 : index
    %c256 = arith.constant 256 : index
    %4 = vector.load %arg2[%c0_6, %c256] : memref<32x288xf32, #tpu.memory_space<vmem>>, vector<32x32xf32>
    %c0_7 = arith.constant 0 : index
    %c0_8 = arith.constant 0 : index
    %5 = vector.load %arg3[%c0_7, %c0_8] : memref<128x32xf32, #tpu.memory_space<vmem>>, vector<128x32xf32>
    %c0_9 = arith.constant 0 : index
    %c0_10 = arith.constant 0 : index
    %6 = vector.load %arg4[%c0_9, %c0_10] : memref<8x128xf32, #tpu.memory_space<vmem>>, vector<1x128xf32>
    %c1 = arith.constant 1 : index
    %c0_11 = arith.constant 0 : index
    %7 = vector.load %arg4[%c1, %c0_11] : memref<8x128xf32, #tpu.memory_space<vmem>>, vector<1x96xf32>
    %c2 = arith.constant 2 : index
    %c0_12 = arith.constant 0 : index
    %8 = vector.load %arg4[%c2, %c0_12] : memref<8x128xf32, #tpu.memory_space<vmem>>, vector<1x32xf32>
    %c3 = arith.constant 3 : index
    %c0_13 = arith.constant 0 : index
    %9 = vector.load %arg4[%c3, %c0_13] : memref<8x128xf32, #tpu.memory_space<vmem>>, vector<1x32xf32>
    %c4 = arith.constant 4 : index
    %c0_14 = arith.constant 0 : index
    %10 = vector.load %arg4[%c4, %c0_14] : memref<8x128xf32, #tpu.memory_space<vmem>>, vector<1x32xf32>
    %c5 = arith.constant 5 : index
    %c0_15 = arith.constant 0 : index
    %11 = vector.load %arg4[%c5, %c0_15] : memref<8x128xf32, #tpu.memory_space<vmem>>, vector<1x32xf32>
    %c6 = arith.constant 6 : index
    %c0_16 = arith.constant 0 : index
    %12 = vector.load %arg4[%c6, %c0_16] : memref<8x128xf32, #tpu.memory_space<vmem>>, vector<1x32xf32>
    %c7 = arith.constant 7 : index
    %c0_17 = arith.constant 0 : index
    %13 = vector.load %arg4[%c7, %c0_17] : memref<8x128xf32, #tpu.memory_space<vmem>>, vector<1x32xf32>
    %cst = arith.constant dense<0.000000e+00> : vector<16xf32>
    %14 = vector.multi_reduction <add>, %0, %cst [1] : vector<16x32xf32> to vector<16xf32>
    %15 = vector.shape_cast %14 : vector<16xf32> to vector<16x1xf32>
    %cst_18 = arith.constant 3.200000e+01 : f32
    %16 = vector.broadcast %cst_18 : f32 to vector<16x1xf32>
    %17 = arith.divf %15, %16 : vector<16x1xf32>
    %18 = vector.broadcast %17 : vector<16x1xf32> to vector<16x32xf32>
    %19 = arith.subf %0, %18 : vector<16x32xf32>
    %20 = arith.mulf %19, %19 : vector<16x32xf32>
    %cst_19 = arith.constant dense<0.000000e+00> : vector<16xf32>
    %21 = vector.multi_reduction <add>, %20, %cst_19 [1] : vector<16x32xf32> to vector<16xf32>
    %22 = vector.shape_cast %21 : vector<16xf32> to vector<16x1xf32>
    %cst_20 = arith.constant 3.200000e+01 : f32
    %23 = vector.broadcast %cst_20 : f32 to vector<16x1xf32>
    %24 = arith.divf %22, %23 : vector<16x1xf32>
    %25 = vector.broadcast %17 : vector<16x1xf32> to vector<16x32xf32>
    %26 = arith.subf %0, %25 : vector<16x32xf32>
    %cst_21 = arith.constant 9.99999974E-6 : f32
    %27 = vector.broadcast %cst_21 : f32 to vector<16x1xf32>
    %28 = arith.addf %24, %27 : vector<16x1xf32>
    %29 = math.rsqrt %28 : vector<16x1xf32>
    %30 = vector.broadcast %29 : vector<16x1xf32> to vector<16x32xf32>
    %31 = arith.mulf %26, %30 : vector<16x32xf32>
    %32 = vector.broadcast %8 : vector<1x32xf32> to vector<16x32xf32>
    %33 = arith.mulf %31, %32 : vector<16x32xf32>
    %34 = vector.broadcast %9 : vector<1x32xf32> to vector<16x32xf32>
    %35 = arith.addf %33, %34 : vector<16x32xf32>
    %cst_22 = arith.constant dense<0.000000e+00> : vector<16x96xf32>
    %36 = tpu.matmul %35, %3, %cst_22 {dimension_numbers = #tpu.dot_dimension_numbers<[1], [0], [0], [1], [0, 0, 1, 1], [], []>} : vector<16x32xf32>, vector<32x96xf32>, vector<16x96xf32> -> vector<16x96xf32>
    %37 = vector.broadcast %7 : vector<1x96xf32> to vector<16x96xf32>
    %38 = arith.addf %36, %37 : vector<16x96xf32>
    %39 = vector.extract_strided_slice %38 {offsets = [0, 0], sizes = [16, 32], strides = [1, 1]} : vector<16x96xf32> to vector<16x32xf32>
    %40 = vector.shape_cast %39 : vector<16x32xf32> to vector<2x8x4x8xf32>
    %41 = tpu.transpose %40, [0, 2, 1, 3] : vector<2x8x4x8xf32> -> vector<2x4x8x8xf32>
    %42 = vector.shape_cast %41 : vector<2x4x8x8xf32> to vector<8x8x8xf32>
    %43 = vector.extract_strided_slice %38 {offsets = [0, 32], sizes = [16, 32], strides = [1, 1]} : vector<16x96xf32> to vector<16x32xf32>
    %44 = vector.shape_cast %43 : vector<16x32xf32> to vector<2x8x4x8xf32>
    %45 = tpu.transpose %44, [0, 2, 1, 3] : vector<2x8x4x8xf32> -> vector<2x4x8x8xf32>
    %46 = vector.shape_cast %45 : vector<2x4x8x8xf32> to vector<8x8x8xf32>
    %47 = vector.extract_strided_slice %38 {offsets = [0, 64], sizes = [16, 32], strides = [1, 1]} : vector<16x96xf32> to vector<16x32xf32>
    %48 = vector.shape_cast %47 : vector<16x32xf32> to vector<2x8x4x8xf32>
    %49 = tpu.transpose %48, [0, 2, 1, 3] : vector<2x8x4x8xf32> -> vector<2x4x8x8xf32>
    %50 = vector.shape_cast %49 : vector<2x4x8x8xf32> to vector<8x8x8xf32>
    %51 = tpu.iota {dimensions = array<i32: 0>} : vector<8x8xi32>
    %52 = tpu.iota {dimensions = array<i32: 1>} : vector<8x8xi32>
    %53 = arith.cmpi sgt, %52, %51 : vector<8x8xi32>
    %cst_23 = arith.constant -1.000000e+30 : f32
    %cst_24 = arith.constant 0.000000e+00 : f32
    %54 = vector.broadcast %cst_23 : f32 to vector<8x8xf32>
    %55 = vector.broadcast %cst_24 : f32 to vector<8x8xf32>
    %56 = arith.select %53, %54, %55 : vector<8x8xi1>, vector<8x8xf32>
    %cst_25 = arith.constant 5.000000e-01 : f32
    %57 = vector.broadcast %cst_25 : f32 to vector<2x8xf32>
    %58 = arith.cmpf ogt, %1, %57 : vector<2x8xf32>
    %cst_26 = arith.constant 0.000000e+00 : f32
    %cst_27 = arith.constant -1.000000e+30 : f32
    %59 = vector.broadcast %cst_26 : f32 to vector<2x8xf32>
    %60 = vector.broadcast %cst_27 : f32 to vector<2x8xf32>
    %61 = arith.select %58, %59, %60 : vector<2x8xi1>, vector<2x8xf32>
    %62 = vector.shape_cast %56 : vector<8x8xf32> to vector<1x1x8x8xf32>
    %63 = vector.shape_cast %61 : vector<2x8xf32> to vector<2x1x1x8xf32>
    %64 = vector.broadcast %62 : vector<1x1x8x8xf32> to vector<2x1x8x8xf32>
    %65 = vector.broadcast %63 : vector<2x1x1x8xf32> to vector<2x1x8x8xf32>
    %66 = arith.addf %64, %65 : vector<2x1x8x8xf32>
    %67 = vector.shape_cast %66 : vector<2x1x8x8xf32> to vector<2x1x8x8xf32>
    %68 = vector.broadcast %67 : vector<2x1x8x8xf32> to vector<2x4x8x8xf32>
    %69 = vector.shape_cast %68 : vector<2x4x8x8xf32> to vector<8x8x8xf32>
    "tpu.trace_start"() <{level = 10 : i32, message = "nqd,nkd->nqk"}> : () -> ()
    %cst_28 = arith.constant dense<0.000000e+00> : vector<8x8x8xf32>
    %70 = tpu.matmul %42, %46, %cst_28 {dimension_numbers = #tpu.dot_dimension_numbers<[2], [2], [1], [1], [0, 0, 0, 1, 1, 1], [0], [0]>} : vector<8x8x8xf32>, vector<8x8x8xf32>, vector<8x8x8xf32> -> vector<8x8x8xf32>
    "tpu.trace_stop"() : () -> ()
    %cst_29 = arith.constant 0.353553385 : f32
    %71 = vector.broadcast %cst_29 : f32 to vector<8x8x8xf32>
    %72 = arith.mulf %70, %71 : vector<8x8x8xf32>
    %73 = arith.addf %72, %69 : vector<8x8x8xf32>
    %cst_30 = arith.constant dense<0xFF800000> : vector<8x8xf32>
    %74 = vector.multi_reduction <maximumf>, %73, %cst_30 [2] : vector<8x8x8xf32> to vector<8x8xf32>
    %75 = vector.shape_cast %74 : vector<8x8xf32> to vector<8x8x1xf32>
    %76 = vector.broadcast %75 : vector<8x8x1xf32> to vector<8x8x8xf32>
    %77 = arith.subf %73, %76 : vector<8x8x8xf32>
    %78 = math.exp %77 : vector<8x8x8xf32>
    %cst_31 = arith.constant dense<0.000000e+00> : vector<8x8xf32>
    %79 = vector.multi_reduction <add>, %78, %cst_31 [2] : vector<8x8x8xf32> to vector<8x8xf32>
    %80 = vector.shape_cast %79 : vector<8x8xf32> to vector<8x8x1xf32>
    %81 = vector.broadcast %80 : vector<8x8x1xf32> to vector<8x8x8xf32>
    %82 = arith.divf %78, %81 : vector<8x8x8xf32>
    "tpu.trace_start"() <{level = 10 : i32, message = "nqk,nkd->nqd"}> : () -> ()
    %cst_32 = arith.constant dense<0.000000e+00> : vector<8x8x8xf32>
    %83 = tpu.matmul %82, %50, %cst_32 {dimension_numbers = #tpu.dot_dimension_numbers<[2], [1], [1], [2], [0, 0, 0, 1, 1, 2], [0], [0]>} : vector<8x8x8xf32>, vector<8x8x8xf32>, vector<8x8x8xf32> -> vector<8x8x8xf32>
    "tpu.trace_stop"() : () -> ()
    %84 = vector.shape_cast %83 : vector<8x8x8xf32> to vector<2x4x8x8xf32>
    %85 = tpu.transpose %84, [0, 2, 1, 3] : vector<2x4x8x8xf32> -> vector<2x8x4x8xf32>
    %86 = vector.shape_cast %85 : vector<2x8x4x8xf32> to vector<16x32xf32>
    %cst_33 = arith.constant dense<0.000000e+00> : vector<16x32xf32>
    %87 = tpu.matmul %86, %4, %cst_33 {dimension_numbers = #tpu.dot_dimension_numbers<[1], [0], [0], [1], [0, 0, 1, 1], [], []>} : vector<16x32xf32>, vector<32x32xf32>, vector<16x32xf32> -> vector<16x32xf32>
    %88 = vector.broadcast %12 : vector<1x32xf32> to vector<16x32xf32>
    %89 = arith.addf %87, %88 : vector<16x32xf32>
    %90 = arith.addf %0, %89 : vector<16x32xf32>
    %cst_34 = arith.constant dense<0.000000e+00> : vector<16xf32>
    %91 = vector.multi_reduction <add>, %90, %cst_34 [1] : vector<16x32xf32> to vector<16xf32>
    %92 = vector.shape_cast %91 : vector<16xf32> to vector<16x1xf32>
    %cst_35 = arith.constant 3.200000e+01 : f32
    %93 = vector.broadcast %cst_35 : f32 to vector<16x1xf32>
    %94 = arith.divf %92, %93 : vector<16x1xf32>
    %95 = vector.broadcast %94 : vector<16x1xf32> to vector<16x32xf32>
    %96 = arith.subf %90, %95 : vector<16x32xf32>
    %97 = arith.mulf %96, %96 : vector<16x32xf32>
    %cst_36 = arith.constant dense<0.000000e+00> : vector<16xf32>
    %98 = vector.multi_reduction <add>, %97, %cst_36 [1] : vector<16x32xf32> to vector<16xf32>
    %99 = vector.shape_cast %98 : vector<16xf32> to vector<16x1xf32>
    %cst_37 = arith.constant 3.200000e+01 : f32
    %100 = vector.broadcast %cst_37 : f32 to vector<16x1xf32>
    %101 = arith.divf %99, %100 : vector<16x1xf32>
    %102 = vector.broadcast %94 : vector<16x1xf32> to vector<16x32xf32>
    %103 = arith.subf %90, %102 : vector<16x32xf32>
    %cst_38 = arith.constant 9.99999974E-6 : f32
    %104 = vector.broadcast %cst_38 : f32 to vector<16x1xf32>
    %105 = arith.addf %101, %104 : vector<16x1xf32>
    %106 = math.rsqrt %105 : vector<16x1xf32>
    %107 = vector.broadcast %106 : vector<16x1xf32> to vector<16x32xf32>
    %108 = arith.mulf %103, %107 : vector<16x32xf32>
    %109 = vector.broadcast %10 : vector<1x32xf32> to vector<16x32xf32>
    %110 = arith.mulf %108, %109 : vector<16x32xf32>
    %111 = vector.broadcast %11 : vector<1x32xf32> to vector<16x32xf32>
    %112 = arith.addf %110, %111 : vector<16x32xf32>
    %cst_39 = arith.constant dense<0.000000e+00> : vector<16x128xf32>
    %113 = tpu.matmul %112, %2, %cst_39 {dimension_numbers = #tpu.dot_dimension_numbers<[1], [0], [0], [1], [0, 0, 1, 1], [], []>} : vector<16x32xf32>, vector<32x128xf32>, vector<16x128xf32> -> vector<16x128xf32>
    %114 = vector.broadcast %6 : vector<1x128xf32> to vector<16x128xf32>
    %115 = arith.addf %113, %114 : vector<16x128xf32>
    %cst_40 = arith.constant 5.000000e-01 : f32
    %116 = vector.broadcast %cst_40 : f32 to vector<16x128xf32>
    %117 = arith.mulf %116, %115 : vector<16x128xf32>
    %cst_41 = arith.constant 0.707106769 : f32
    %118 = vector.broadcast %cst_41 : f32 to vector<16x128xf32>
    %119 = arith.mulf %115, %118 : vector<16x128xf32>
    %120 = math.erf %119 : vector<16x128xf32>
    %cst_42 = arith.constant 1.000000e+00 : f32
    %121 = vector.broadcast %cst_42 : f32 to vector<16x128xf32>
    %122 = arith.addf %121, %120 : vector<16x128xf32>
    %123 = arith.mulf %117, %122 : vector<16x128xf32>
    %cst_43 = arith.constant dense<0.000000e+00> : vector<16x32xf32>
    %124 = tpu.matmul %123, %5, %cst_43 {dimension_numbers = #tpu.dot_dimension_numbers<[1], [0], [0], [1], [0, 0, 1, 1], [], []>} : vector<16x128xf32>, vector<128x32xf32>, vector<16x32xf32> -> vector<16x32xf32>
    %125 = vector.broadcast %13 : vector<1x32xf32> to vector<16x32xf32>
    %126 = arith.addf %124, %125 : vector<16x32xf32>
    %127 = arith.addf %90, %126 : vector<16x32xf32>
    %c0_44 = arith.constant 0 : index
    %c0_45 = arith.constant 0 : index
    %128 = vector.load %arg5[%c0_44, %c0_45] : memref<16x32xf32, #tpu.memory_space<vmem>>, vector<16x32xf32>
    tpu.vector_store %arg5[%c0_44, %c0_45], %127 {strides = array<i32>} : memref<16x32xf32, #tpu.memory_space<vmem>>, vector<16x32xf32>,
    return
  }
}

</mosaic_0001>

<bundles_post_ra>
// kernel: tpu_custom_call.1
= control target key start
LH: loop header
LB: loop body
LE: loop exit
PB: predicated region body
PF: predicated region fallthrough
CT: control target
= control target key end

     0   :  { %vm60_vm0 = vcmask 261120   ;;  %s2869_s0 = inlined_call_operand.vmem [shape: f32[16,32], index: 0, kind: input, shape index: {}]   ;;  %s2870_s1 = inlined_call_operand.vmem [shape: f32[2,8], index: 1, kind: input, shape index: {}]   ;;  %s2871_s2 = inlined_call_operand.vmem [shape: f32[32,288], index: 2, kind: input, shape index: {}]   ;;  %s2872_s3 = inlined_call_operand.vmem [shape: f32[128,32], index: 3, kind: input, shape index: {}]   ;;  %s2873_s4 = inlined_call_operand.vmem [shape: f32[8,128], index: 4, kind: input, shape index: {}]   ;;  %s2874_s5 = inlined_call_operand.hbm [shape: f32[16,32], index: 5, kind: output, shape index: {}]  }
   0x1   :  { %v21_v0 = vld [vmem:[%s2869_s0] sm:$0xff] }
   0x2   :  { %v61_v1 = vsel %vm60_vm0, %v21_v0, 0.0 }
   0x3   :  { %62 = vadd.xlane.f32.xlu0 %v61_v1 }
   0x4   :  { %10 = vsyncpa [#allocation3], 0  ;;  %v22_v2 = vld [vmem:[%s2869_s0 + $0x8] sm:$0xff]  ;;  %v2141_v4 = vmov 32.0   ;;  %v31_v21 = vld [vmem:[%s2871_s2 + $0x50] sm:$0xff]  ;;  %s2142_s11 = smov 104  }
   0x5   :  { %v64_v3 = vsel %vm60_vm0, %v22_v2, 0.0  ;;  %2067 = vrcp.f32 %v2141_v4  ;;  %137 = vmatpush.msra.mxu0 %v31_v21  ;;  %v30_v22 = vld [vmem:[%s2871_s2 + $0x38] sm:$0xff]  ;;  %v29_v23 = vld [vmem:[%s2871_s2 + $0x20] sm:$0xff]  ;;  %v28_v24 = vld [vmem:[%s2871_s2 + $0x8] sm:$0xff]  ;;  %s2143_s12 = smov 120   ;;  %s2144_s13 = smov 112  }
   0x6   :  { %v2059_v39 = vld [vmem:[%s2873_s4 + $0x2] ss:$0 sm:$0xff]  ;;  %v2060_v43 = vld [vmem:[%s2873_s4 + $0x3] ss:$0 sm:$0xff]  ;;  %v2061_v53 = vld [vmem:[%s2873_s4 + $0x1] ss:$0 sm:$0xff] }
   0x7   :  { %138 = vmatpush.msra.mxu0 %v30_v22  ;;  %s2145_s14 = smov 96   ;;  %v2146_v60 = vmov 1983009808   ;;  %vm169_vm8 = vcmask 1047556   ;;  %v2147_v4 = vmov 1934713408  }
   0x8   :  { %v174_v61 = vunpack.c.l.s4 %v2146_v60  ;;  %s2148_s15 = smov 64   ;;  %vm893_vm9 = vcmask 64512   ;;  %s2152_s18 = smov 24  }
   0x9   :  { %139 = vmatpush.msra.mxu0 %v29_v23  ;;  %s2153_s19 = smov 8   ;;  %s1980_s29 = sshll.u32 %s2874_s5, 4  ;;  %s1981_s29 = int_to_ptr.hbm [resolvable:$true] %s1980_s29 }
   0xa   :  { %v2248_v1 = vunpack.c.0.s8 %v174_v61  ;;  %s2154_s30 = smov [#allocation2]  }
   0xb   :  { %65 = vadd.xlane.f32.xlu0 %v64_v3  ;;  %v2068_v5 = vpop.eup %2067  ;;  %140 = vmatpush.msra.mxu0 %v28_v24  ;;  %s1978_s6 = sshll.u32 %s2154_s30, 4  ;;  %s1979_s6 = int_to_ptr.vmem [resolvable:$true] %s1978_s6 }
   0xc   :  { %v68_v6 = vmul.f32 32.0, %v2068_v5  ;;  %vm72_vm1 = vweird.f32 %v2068_v5 }
   0xe   :  { %v69_v7 = vsub.f32 1.0, %v68_v6 }
  0x10   :  { %v70_v8 = vmul.f32 %v2068_v5, %v69_v7 }
  0x12   :  { %v71_v9 = vadd.f32 %v2068_v5, %v70_v8 }
  0x14   :  { %v2194_v10 = vsel %vm72_vm1, %v2068_v5, %v71_v9  ;;  %v198_v5 = vunpack.c.l.s4 %v2147_v4 }
  0x76   :  { %v63_v11 = vpop.xlane.xlu0 %62 }
  0x77   :  { %v74_v12 = vmul.f32 %v2194_v10, %v63_v11 }
  0x79   :  { %v76_v13 = vsub.f32 %v21_v0, %v74_v12 }
  0x7b   :  { %v78_v14 = vmul.f32 %v76_v13, %v76_v13 }
  0x7d   :  { %v80_v15 = vsel %vm60_vm0, %v78_v14, 0.0 }
  0x7e   :  { %81 = vadd.xlane.f32.xlu1 %v80_v15  ;;  %v66_v16 = vpop.xlane.xlu0 %65  ;;  %v2264_v15 = vunpack.c.0.s8 %v198_v5 }
  0x7f   :  { %v75_v17 = vmul.f32 %v2194_v10, %v66_v16 }
  0x81   :  { %v77_v18 = vsub.f32 %v22_v2, %v75_v17 }
  0x83   :  { %v79_v19 = vmul.f32 %v77_v18, %v77_v18 }
  0x85   :  { %v83_v20 = vsel %vm60_vm0, %v79_v19, 0.0 }
  0x86   :  { %84 = vadd.xlane.f32.xlu1 %v83_v20 }
  0xf1   :  { %v82_v25 = vpop.xlane.xlu1 %81 }
  0xf2   :  { %v86_v26 = vmul.f32 %v82_v25, %v2194_v10 }
  0xf4   :  { %v88_v27 = vadd.f32 1e-05, %v86_v26 }
  0xf6   :  { %2069 = vrsqrt.f32 %v88_v27  ;;  %vm96_vm3 = vweird.f32 %v88_v27 }
  0xf9   :  { %v85_v28 = vpop.xlane.xlu1 %84 }
  0xfa   :  { %v87_v29 = vmul.f32 %v85_v28, %v2194_v10 }
  0xfc   :  { %v2070_v30 = vpop.eup %2069  ;;  %v89_v31 = vadd.f32 1e-05, %v87_v29 }
  0xfd   :  { %v91_v32 = vmul.f32 %v2070_v30, %v88_v27  ;;  %vm97_vm2 = vweird.f32 %v2070_v30 }
  0xfe   :  { %2071 = vrsqrt.f32 %v89_v31  ;;  %vm98_vm4 = vmor %vm96_vm3, %vm97_vm2  ;;  %vm106_vm5 = vweird.f32 %v89_v31 }
  0xff   :  { %v92_v33 = vmul.f32 %v2070_v30, %v91_v32 }
 0x101   :  { %v93_v34 = vmul.f32 0.5, %v92_v33 }
 0x103   :  { %v94_v35 = vsub.f32 1.5, %v93_v34 }
 0x104   :  { %v2072_v36 = vpop.eup %2071 }
 0x105   :  { %v95_v37 = vmul.f32 %v2070_v30, %v94_v35  ;;  %v101_v38 = vmul.f32 %v2072_v36, %v89_v31  ;;  %vm107_vm6 = vweird.f32 %v2072_v36 }
 0x106   :  { %vm108_vm7 = vmor %vm106_vm5, %vm107_vm6 }
 0x107   :  { %v99_v40 = vsel %vm98_vm4, %v2070_v30, %v95_v37  ;;  %v102_v41 = vmul.f32 %v2072_v36, %v101_v38 }
 0x108   :  { %v110_v42 = vmul.f32 %v99_v40, %v76_v13 }
 0x109   :  { %v103_v44 = vmul.f32 0.5, %v102_v41 }
 0x10a   :  { %v113_v45 = vmul.f32 %v2059_v39, %v110_v42 }
 0x10b   :  { %v104_v46 = vsub.f32 1.5, %v103_v44 }
 0x10c   :  { %v116_v47 = vadd.f32 %v2060_v43, %v113_v45 }
 0x10d   :  { %v105_v48 = vmul.f32 %v2072_v36, %v104_v46 }
 0x10e   :  { %1992 = vmatmul.msk.f32.vlgmr.msra.gmra.mxu0 %vm60_vm0, %v116_v47 }
 0x10f   :  { %v109_v49 = vsel %vm108_vm7, %v2072_v36, %v105_v48 }
 0x110   :  { %v111_v50 = vmul.f32 %v109_v49, %v77_v18 }
 0x112   :  { %v114_v51 = vmul.f32 %v2059_v39, %v111_v50 }
 0x114   :  { %v117_v52 = vadd.f32 %v2060_v43, %v114_v51 }
 0x116   :  { %1993 = vmatmul.msk.f32.gmra.mxu0 %vm60_vm0, %v117_v52 }
 0x18b   :  { %v142_v54 = vpop.f32.mrf.mxu0 }
 0x18c   :  { %v2225_v55 = vadd.f32 %v2061_v53, %v142_v54 }
 0x18e   :  { %162 = vrot.lane.b32.xlu0 %v2225_v55, %s2142_s11  ;;  %150 = vrot.lane.b32.xlu2 %v2225_v55, %s2143_s12  ;;  %v171_v0 = vrot.slane %v2225_v55, 4 }
 0x193   :  { %v145_v56 = vpop.f32.mrf.mxu0 }
 0x194   :  { %v2229_v57 = vadd.f32 %v2061_v53, %v145_v56 }
 0x196   :  { %156 = vrot.lane.b32.xlu2 %v2225_v55, %s2144_s13  ;;  %152 = vrot.lane.b32.xlu1 %v2229_v57, %s2143_s12  ;;  %v227_v11 = vrot.slane %v2229_v57, 4 }
 0x19e   :  { %158 = vrot.lane.b32.xlu2 %v2229_v57, %s2144_s13 }
 0x1a6   :  { %164 = vrot.lane.b32.xlu2 %v2229_v57, %s2142_s11 }
 0x1ae   :  { %389 = vrot.lane.b32.xlu2 %v2225_v55, %s2145_s14 }
 0x1e8   :  { %v151_v58 = vpop.permute.xlu2 %150 }
 0x1e9   :  { %393 = vrot.lane.b32.xlu0 %v151_v58, %s2145_s14  ;;  %v183_v7 = vrot.slane %v151_v58, 4  ;;  %v2039_v36 = vpack.i.bf16 %v151_v58, %v2225_v55 }
 0x1f0   :  { %v2238_v59 = vpop.permute.xlu2 %156 }
 0x1f1   :  { %391 = vrot.lane.b32.xlu0 %v2229_v57, %s2145_s14  ;;  %397 = vrot.lane.b32.xlu2 %v2238_v59, %s2145_s14  ;;  %v168_v62 = vrot.slane %v2238_v59, 4  ;;  %v172_v2 = vsel %vm169_vm8, %v2238_v59, %v171_v0 }
 0x1f2   :  { %v180_v6 = vperm.slane %v172_v2, %v2248_v1 }
 0x1f3   :  { %v170_v3 = vsel %vm169_vm8, %v168_v62, %v2225_v55 }
 0x1f4   :  { %v176_v8 = vperm.slane %v170_v3, %v2248_v1  ;;  %v207_v18 = vrot.slane %v180_v6, 4 }
 0x1f6   :  { %v195_v21 = vrot.slane %v176_v8, 4 }
 0x1f8   :  { %v2245_v63 = vpop.permute.xlu2 %158 }
 0x1f9   :  { %v225_v9 = vrot.slane %v2245_v63, 4  ;;  %v228_v14 = vsel %vm169_vm8, %v2245_v63, %v227_v11 }
 0x1fa   :  { %v236_v24 = vperm.slane %v228_v14, %v2248_v1 }
 0x1fb   :  { %v226_v22 = vsel %vm169_vm8, %v225_v9, %v2229_v57 }
 0x1fc   :  { %v232_v29 = vperm.slane %v226_v22, %v2248_v1  ;;  %v263_v37 = vrot.slane %v236_v24, 4 }
 0x1fe   :  { %v251_v45 = vrot.slane %v232_v29, 4 }
 0x200   :  { %v2258_v12 = vpop.permute.xlu2 %164  ;;  %v2260_v13 = vpop.permute.xlu0 %162 }
 0x201   :  { %v181_v16 = vrot.slane %v2260_v13, 4  ;;  %v184_v17 = vsel %vm169_vm8, %v2260_v13, %v183_v7  ;;  %403 = vrot.lane.b32.xlu0 %v2258_v12, %s2145_s14  ;;  %401 = vrot.lane.b32.xlu1 %v2260_v13, %s2145_s14  ;;  %v2054_v20 = vpack.i.bf16 %v2258_v12, %v2245_v63  ;;  %v237_v38 = vrot.slane %v2258_v12, 4 }
 0x202   :  { %v192_v19 = vperm.slane %v184_v17, %v2248_v1 }
 0x203   :  { %v182_v23 = vsel %vm169_vm8, %v181_v16, %v151_v58 }
 0x204   :  { %v188_v25 = vperm.slane %v182_v23, %v2248_v1  ;;  %v205_v26 = vrot.slane %v192_v19, 4  ;;  %v208_v27 = vsel %vm169_vm8, %v192_v19, %v207_v18 }
 0x205   :  { %v216_v28 = vperm.slane %v208_v27, %v2264_v15 }
 0x206   :  { %v193_v30 = vrot.slane %v188_v25, 4  ;;  %v196_v31 = vsel %vm169_vm8, %v188_v25, %v195_v21  ;;  %v206_v32 = vsel %vm169_vm8, %v205_v26, %v180_v6 }
 0x207   :  { %v204_v33 = vperm.slane %v196_v31, %v2264_v15  ;;  %v212_v34 = vperm.slane %v206_v32, %v2264_v15  ;;  %v223_v35 = vrot.slane %v216_v28, 4 }
 0x208   :  { %v194_v39 = vsel %vm169_vm8, %v193_v30, %v176_v8  ;;  %v2291_v40 = vpop.permute.xlu1 %152 }
 0x209   :  { %v200_v41 = vperm.slane %v194_v39, %v2264_v15  ;;  %v219_v42 = vrot.slane %v204_v33, 4  ;;  %v221_v43 = vrot.slane %v212_v34, 4  ;;  %v224_v44 = vsel %vm169_vm8, 0.0, %v223_v35  ;;  %2040 = vrot.lane.b32.xlu0 %v2039_v36, %s2148_s15  ;;  %395 = vrot.lane.b32.xlu2 %v2291_v40, %s2145_s14 }
 0x20a   :  { %v297_v46 = vrot.slane %v224_v44, 4  ;;  %v238_v47 = vsel %vm169_vm8, %v237_v38, %v2291_v40  ;;  %v239_v48 = vrot.slane %v2291_v40, 4  ;;  %399 = vrot.lane.b32.xlu1 %v2245_v63, %s2145_s14  ;;  %v292_v56 = vsel %vm169_vm8, %v223_v35, %v212_v34 }
 0x20b   :  { %v244_v49 = vperm.slane %v238_v47, %v2248_v1  ;;  %v217_v50 = vrot.slane %v200_v41, 4  ;;  %v220_v51 = vsel %vm169_vm8, 0.0, %v219_v42  ;;  %v222_v52 = vsel %vm169_vm8, 0.0, %v221_v43 }
 0x20c   :  { %v240_v53 = vsel %vm169_vm8, %v2258_v12, %v239_v48  ;;  %v281_v54 = vsel %vm169_vm8, %v219_v42, %v200_v41  ;;  %v286_v55 = vrot.slane %v220_v51, 4  ;;  %v296_v4 = vperm.slane %v292_v56, %v2248_v1 }
 0x20d   :  { %v248_v58 = vperm.slane %v240_v53, %v2248_v1  ;;  %v249_v60 = vrot.slane %v244_v49, 4  ;;  %v252_v61 = vsel %vm169_vm8, %v244_v49, %v251_v45  ;;  %v218_v62 = vsel %vm169_vm8, 0.0, %v217_v50 }
 0x20e   :  { %v260_v0 = vperm.slane %v252_v61, %v2264_v15  ;;  %v285_v2 = vperm.slane %v281_v54, %v2248_v1  ;;  %v287_v3 = vsel %vm169_vm8, %v286_v55, %v218_v62  ;;  %v298_v16 = vsel %vm169_vm8, %v297_v46, %v222_v52 }
 0x20f   :  { %v250_v5 = vsel %vm169_vm8, %v249_v60, %v232_v29  ;;  %v261_v6 = vrot.slane %v248_v58, 4  ;;  %v264_v7 = vsel %vm169_vm8, %v248_v58, %v263_v37  ;;  %v291_v8 = vperm.slane %v287_v3, %v2248_v1 }
 0x210   :  { %v256_v9 = vperm.slane %v250_v5, %v2264_v15  ;;  %v272_v11 = vperm.slane %v264_v7, %v2264_v15  ;;  %v275_v14 = vrot.slane %v260_v0, 4  ;;  %v302_v18 = vperm.slane %v298_v16, %v2248_v1 }
 0x211   :  { %v262_v17 = vsel %vm169_vm8, %v261_v6, %v236_v24  ;;  %v305_v19 = vrot.slane %v285_v2, 4  ;;  %v317_v21 = vrot.slane %v296_v4, 4  ;;  %v303_v30 = vrot.slane %v291_v8, 4 }
 0x212   :  { %v268_v22 = vperm.slane %v262_v17, %v2264_v15  ;;  %v273_v23 = vrot.slane %v256_v9, 4  ;;  %v276_v25 = vsel %vm169_vm8, 0.0, %v275_v14  ;;  %v279_v26 = vrot.slane %v272_v11, 4 }
 0x213   :  { %v340_v27 = vrot.slane %v276_v25, 4  ;;  %v306_v28 = vsel %vm169_vm8, %v291_v8, %v305_v19  ;;  %v318_v29 = vsel %vm169_vm8, %v302_v18, %v317_v21  ;;  %v304_v35 = vsel %vm169_vm8, %v303_v30, %v285_v2  ;;  %v390_v25 = vpop.permute.xlu2 %389 }
 0x214   :  { %v274_v31 = vsel %vm169_vm8, 0.0, %v273_v23  ;;  %v280_v24 = vsel %vm169_vm8, 0.0, %v279_v26  ;;  %v314_v32 = vperm.slane %v306_v28, %v2264_v15  ;;  %v326_v33 = vperm.slane %v318_v29, %v2264_v15 }
 0x215   :  { %v351_v34 = vrot.slane %v280_v24, 4  ;;  %v315_v36 = vrot.slane %v302_v18, 4  ;;  %v277_v37 = vrot.slane %v268_v22, 4  ;;  %v310_v41 = vperm.slane %v304_v35, %v2264_v15 }
 0x216   :  { %v331_v38 = vrot.slane %v326_v33, 4  ;;  %v333_v39 = vrot.slane %v314_v32, 4  ;;  %v335_v42 = vsel %vm169_vm8, %v275_v14, %v256_v9  ;;  %v341_v46 = vsel %vm169_vm8, %v340_v27, %v274_v31 }
 0x217   :  { %v316_v43 = vsel %vm169_vm8, %v315_v36, %v296_v4  ;;  %v278_v44 = vsel %vm169_vm8, 0.0, %v277_v37  ;;  %v339_v45 = vperm.slane %v335_v42, %v2248_v1  ;;  %v329_v49 = vrot.slane %v310_v41, 4 }
 0x218   :  { %v2341_v47 = vsel %vm169_vm8, %v331_v38, %v314_v32  ;;  %v322_v48 = vperm.slane %v316_v43, %v2264_v15  ;;  %v345_v50 = vperm.slane %v341_v46, %v2248_v1  ;;  %v346_v51 = vsel %vm169_vm8, %v279_v26, %v268_v22 }
 0x219   :  { %v352_v52 = vsel %vm169_vm8, %v351_v34, %v278_v44  ;;  %v2348_v53 = vsel %vm169_vm8, %v326_v33, %v333_v39  ;;  %v359_v54 = vrot.slane %v339_v45, 4  ;;  %v350_v58 = vperm.slane %v346_v51, %v2248_v1 }
 0x21a   :  { %v327_v55 = vrot.slane %v322_v48, 4  ;;  %v2351_v56 = vsel %vm169_vm8, %v322_v48, %v329_v49  ;;  %v356_v60 = vperm.slane %v352_v52, %v2248_v1  ;;  %v357_v61 = vrot.slane %v345_v50, 4 }
 0x21b   :  { %v360_v62 = vsel %vm169_vm8, %v345_v50, %v359_v54  ;;  %v371_v3 = vrot.slane %v350_v58, 4  ;;  %v415_v30 = vrot.slane %v390_v25, 4 }
 0x21c   :  { %v2357_v0 = vsel %vm169_vm8, %v327_v55, %v310_v41  ;;  %v369_v2 = vrot.slane %v356_v60, 4  ;;  %v368_v4 = vperm.slane %v360_v62, %v2264_v15  ;;  %v358_v5 = vsel %vm169_vm8, %v357_v61, %v339_v45 }
 0x21d   :  { %v364_v6 = vperm.slane %v358_v5, %v2264_v15  ;;  %v372_v8 = vsel %vm169_vm8, %v356_v60, %v371_v3 }
 0x21e   :  { %v370_v7 = vsel %vm169_vm8, %v369_v2, %v350_v58  ;;  %v387_v9 = vrot.slane %v368_v4, 4  ;;  %v380_v14 = vperm.slane %v372_v8, %v2264_v15 }
 0x21f   :  { %v376_v11 = vperm.slane %v370_v7, %v2264_v15  ;;  %v383_v16 = vrot.slane %v364_v6, 4 }
 0x220   :  { %v385_v18 = vrot.slane %v380_v14, 4  ;;  %v2367_v19 = vsel %vm169_vm8, %v380_v14, %v387_v9 }
 0x221   :  { %v381_v17 = vrot.slane %v376_v11, 4  ;;  %v2370_v21 = vsel %vm169_vm8, %v376_v11, %v383_v16 }
 0x222   :  { %v2373_v22 = vsel %vm169_vm8, %v385_v18, %v368_v4 }
 0x223   :  { %v2376_v23 = vsel %vm169_vm8, %v381_v17, %v364_v6 }
 0x24b   :  { %v398_v27 = vpop.permute.xlu2 %397 }
 0x24c   :  { %v413_v28 = vrot.slane %v398_v27, 4  ;;  %v416_v31 = vsel %vm169_vm8, %v398_v27, %v415_v30 }
 0x24d   :  { %v424_v32 = vperm.slane %v416_v31, %v2248_v1 }
 0x24e   :  { %v414_v24 = vsel %vm169_vm8, %v413_v28, %v390_v25 }
 0x24f   :  { %v420_v34 = vperm.slane %v414_v24, %v2248_v1  ;;  %v451_v43 = vrot.slane %v424_v32, 4 }
 0x251   :  { %v439_v45 = vrot.slane %v420_v34, 4 }
 0x25b   :  { %v394_v26 = vpop.permute.xlu0 %393 }
 0x25c   :  { %v427_v35 = vrot.slane %v394_v26, 4 }
 0x263   :  { %v392_v29 = vpop.permute.xlu0 %391  ;;  %v396_v33 = vpop.permute.xlu2 %395 }
 0x264   :  { %v483_v38 = vrot.slane %v396_v33, 4  ;;  %v471_v5 = vrot.slane %v392_v29, 4 }
 0x273   :  { %v402_v36 = vpop.permute.xlu1 %401  ;;  %v404_v37 = vpop.permute.xlu0 %403 }
 0x274   :  { %v425_v39 = vrot.slane %v402_v36, 4  ;;  %v428_v41 = vsel %vm169_vm8, %v402_v36, %v427_v35  ;;  %v481_v42 = vrot.slane %v404_v37, 4  ;;  %v484_v48 = vsel %vm169_vm8, %v404_v37, %v483_v38 }
 0x275   :  { %v436_v44 = vperm.slane %v428_v41, %v2248_v1  ;;  %v492_v61 = vperm.slane %v484_v48, %v2248_v1 }
 0x276   :  { %v426_v46 = vsel %vm169_vm8, %v425_v39, %v394_v26  ;;  %v482_v52 = vsel %vm169_vm8, %v481_v42, %v396_v33 }
 0x277   :  { %v432_v49 = vperm.slane %v426_v46, %v2248_v1  ;;  %v449_v50 = vrot.slane %v436_v44, 4  ;;  %v452_v51 = vsel %vm169_vm8, %v436_v44, %v451_v43  ;;  %v488_v4 = vperm.slane %v482_v52, %v2248_v1 }
 0x278   :  { %v460_v54 = vperm.slane %v452_v51, %v2264_v15  ;;  %v505_v27 = vrot.slane %v492_v61, 4 }
 0x279   :  { %v437_v55 = vrot.slane %v432_v49, 4  ;;  %v440_v58 = vsel %vm169_vm8, %v432_v49, %v439_v45  ;;  %v450_v60 = vsel %vm169_vm8, %v449_v50, %v424_v32  ;;  %v493_v26 = vrot.slane %v488_v4, 4 }
 0x27a   :  { %v448_v62 = vperm.slane %v440_v58, %v2264_v15  ;;  %v456_v2 = vperm.slane %v450_v60, %v2264_v15  ;;  %v467_v3 = vrot.slane %v460_v54, 4 }
 0x27b   :  { %v438_v6 = vsel %vm169_vm8, %v437_v55, %v420_v34 }
 0x27c   :  { %v444_v7 = vperm.slane %v438_v6, %v2264_v15  ;;  %v463_v8 = vrot.slane %v448_v62, 4  ;;  %v468_v9 = vsel %vm169_vm8, 0.0, %v467_v3  ;;  %v400_v11 = vpop.permute.xlu1 %399  ;;  %v465_v14 = vrot.slane %v456_v2, 4 }
 0x27d   :  { %v536_v16 = vsel %vm169_vm8, %v467_v3, %v456_v2  ;;  %v469_v17 = vrot.slane %v400_v11, 4  ;;  %v472_v18 = vsel %vm169_vm8, %v400_v11, %v471_v5  ;;  %v541_v24 = vrot.slane %v468_v9, 4 }
 0x27e   :  { %v464_v25 = vsel %vm169_vm8, 0.0, %v463_v8  ;;  %v480_v28 = vperm.slane %v472_v18, %v2248_v1  ;;  %v540_v31 = vperm.slane %v536_v16, %v2248_v1  ;;  %v461_v36 = vrot.slane %v444_v7, 4 }
 0x27f   :  { %v530_v30 = vrot.slane %v464_v25, 4  ;;  %v470_v32 = vsel %vm169_vm8, %v469_v17, %v392_v29  ;;  %v466_v37 = vsel %vm169_vm8, 0.0, %v465_v14  ;;  %v525_v39 = vsel %vm169_vm8, %v463_v8, %v444_v7 }
 0x280   :  { %v476_v33 = vperm.slane %v470_v32, %v2248_v1  ;;  %v506_v34 = vsel %vm169_vm8, %v505_v27, %v480_v28  ;;  %v507_v35 = vrot.slane %v480_v28, 4  ;;  %v462_v44 = vsel %vm169_vm8, 0.0, %v461_v36 }
 0x281   :  { %v512_v38 = vperm.slane %v506_v34, %v2264_v15  ;;  %v529_v48 = vperm.slane %v525_v39, %v2248_v1  ;;  %v531_v50 = vsel %vm169_vm8, %v530_v30, %v462_v44  ;;  %v542_v51 = vsel %vm169_vm8, %v541_v24, %v466_v37 }
 0x282   :  { %v494_v41 = vsel %vm169_vm8, %v493_v26, %v476_v33  ;;  %v495_v42 = vrot.slane %v476_v33, 4  ;;  %v508_v43 = vsel %vm169_vm8, %v492_v61, %v507_v35  ;;  %v561_v52 = vrot.slane %v540_v31, 4 }
 0x283   :  { %v500_v29 = vperm.slane %v494_v41, %v2264_v15  ;;  %v516_v45 = vperm.slane %v508_v43, %v2264_v15  ;;  %v521_v46 = vrot.slane %v512_v38, 4  ;;  %v535_v60 = vperm.slane %v531_v50, %v2248_v1 }
 0x284   :  { %v496_v49 = vsel %vm169_vm8, %v488_v4, %v495_v42  ;;  %v546_v61 = vperm.slane %v542_v51, %v2248_v1  ;;  %v549_v62 = vrot.slane %v529_v48, 4 }
 0x285   :  { %v504_v54 = vperm.slane %v496_v49, %v2264_v15  ;;  %v523_v55 = vrot.slane %v516_v45, 4  ;;  %v517_v58 = vrot.slane %v500_v29, 4  ;;  %v522_v3 = vsel %vm169_vm8, 0.0, %v521_v46 }
 0x286   :  { %v550_v8 = vsel %vm169_vm8, %v535_v60, %v549_v62  ;;  %v562_v9 = vsel %vm169_vm8, %v546_v61, %v561_v52  ;;  %v547_v17 = vrot.slane %v535_v60, 4  ;;  %v559_v27 = vrot.slane %v546_v61, 4 }
 0x287   :  { %v519_v2 = vrot.slane %v504_v54, 4  ;;  %v524_v4 = vsel %vm169_vm8, 0.0, %v523_v55  ;;  %v590_v5 = vsel %vm169_vm8, %v523_v55, %v512_v38  ;;  %v558_v14 = vperm.slane %v550_v8, %v2264_v15 }
 0x288   :  { %v594_v6 = vperm.slane %v590_v5, %v2248_v1  ;;  %v595_v7 = vrot.slane %v524_v4, 4  ;;  %v570_v16 = vperm.slane %v562_v9, %v2264_v15  ;;  %v518_v28 = vsel %vm169_vm8, 0.0, %v517_v58 }
 0x289   :  { %v520_v11 = vsel %vm169_vm8, 0.0, %v519_v2  ;;  %v548_v32 = vsel %vm169_vm8, %v547_v17, %v529_v48  ;;  %v560_v34 = vsel %vm169_vm8, %v559_v27, %v540_v31  ;;  %v579_v35 = vsel %vm169_vm8, %v519_v2, %v500_v29 }
 0x28a   :  { %v584_v18 = vrot.slane %v520_v11, 4  ;;  %v596_v25 = vsel %vm169_vm8, %v595_v7, %v522_v3  ;;  %v615_v26 = vrot.slane %v594_v6, 4  ;;  %v575_v24 = vrot.slane %v570_v16, 4 }
 0x28b   :  { %v600_v30 = vperm.slane %v596_v25, %v2248_v1  ;;  %v554_v33 = vperm.slane %v548_v32, %v2264_v15  ;;  %v566_v39 = vperm.slane %v560_v34, %v2264_v15  ;;  %v583_v42 = vperm.slane %v579_v35, %v2248_v1 }
 0x28c   :  { %v585_v36 = vsel %vm169_vm8, %v584_v18, %v518_v28  ;;  %v576_v38 = vsel %vm169_vm8, %v575_v24, %v558_v14  ;;  %v577_v50 = vrot.slane %v558_v14, 4  ;;  %v2149_v8 = vmov -1e+30  }
 0x28d   :  { %v613_v37 = vrot.slane %v600_v30, 4  ;;  %1998 = vmatpush.xpose.msk.msra.mxu3 %vm893_vm9, %v576_v38  ;;  %v573_v41 = vrot.slane %v554_v33, 4  ;;  %v589_v43 = vperm.slane %v585_v36, %v2248_v1  ;;  %v616_v44 = vsel %vm169_vm8, %v600_v30, %v615_v26 }
 0x28e   :  { %v571_v45 = vrot.slane %v566_v39, 4  ;;  %v603_v48 = vrot.slane %v583_v42, 4  ;;  %v624_v49 = vperm.slane %v616_v44, %v2264_v15  ;;  %v2150_v11 = vmov 0.0  }
 0x28f   :  { %v614_v31 = vsel %vm169_vm8, %v613_v37, %v594_v6  ;;  %v574_v29 = vsel %vm169_vm8, %v566_v39, %v573_v41  ;;  %v601_v46 = vrot.slane %v589_v43, 4 }
 0x290   :  { %v572_v51 = vsel %vm169_vm8, %v571_v45, %v554_v33  ;;  %1999 = vmatmul.msk.f32.vlgmr.msra.gmra.mxu3 %vm893_vm9, %v2341_v47  ;;  %v604_v54 = vsel %vm169_vm8, %v589_v43, %v603_v48  ;;  %v620_v58 = vperm.slane %v614_v31, %v2264_v15  ;;  %v629_v61 = vrot.slane %v624_v49, 4 }
 0x291   :  { %1994 = vmatpush.xpose.msk.msra.mxu2 %vm893_vm9, %v572_v51  ;;  %v602_v52 = vsel %vm169_vm8, %v601_v46, %v583_v42  ;;  %v612_v60 = vperm.slane %v604_v54, %v2264_v15  ;;  %v578_v47 = vsel %vm169_vm8, %v570_v16, %v577_v50 }
 0x292   :  { %v608_v55 = vperm.slane %v602_v52, %v2264_v15  ;;  %v625_v2 = vrot.slane %v620_v58, 4 }
 0x293   :  { %v630_v4 = vsel %vm169_vm8, %v629_v61, %v612_v60  ;;  %v2044_v61 = vpack.i.bf16 %v2260_v13, %v2238_v59 }
 0x294   :  { %1995 = vmatmul.msk.f32.vlgmr.msra.gmra.mxu2 %vm893_vm9, %v2357_v0  ;;  %v627_v62 = vrot.slane %v608_v55, 4  ;;  %v626_v5 = vsel %vm169_vm8, %v625_v2, %v608_v55  ;;  %v631_v0 = vrot.slane %v612_v60, 4 }
 0x295   :  { %1996 = vmatpush.xpose.msk.msrb.mxu2 %vm893_vm9, %v574_v29 }
 0x296   :  { %v628_v3 = vsel %vm169_vm8, %v620_v58, %v627_v62  ;;  %v632_v6 = vsel %vm169_vm8, %v624_v49, %v631_v0  ;;  %v2041_v62 = vpop.permute.xlu0 %2040 }
 0x297   :  { %2004 = vmatpush.xpose.msk.msrb.mxu3 %vm893_vm9, %v628_v3 }
 0x299   :  { %2000 = vmatpush.xpose.msk.msra.mxu2 %vm893_vm9, %v578_v47  ;;  %v2049_v47 = vpack.i.bf16 %v2291_v40, %v2229_v57 }
 0x29a   :  { %2005 = vmatmul.msk.f32.vlgmr.msrb.gmra.mxu3 %vm893_vm9, %v2370_v21  ;;  %v23_v21 = vld [vmem:[%s2870_s1] sm:$0x3]  ;;  %s2151_s1 = smov 16  }
 0x29b   :  { %2006 = vmatpush.xpose.msk.msra.mxu3 %vm893_vm9, %v630_v4  ;;  %vm883_vm10 = vcmp.gt.f32.partialorder %v23_v21, 0.5 }
 0x29c   :  { %1997 = vmatmul.msk.f32.vlgmr.msrb.gmra.mxu2 %vm893_vm9, %v2351_v56  ;;  %v877_v56 = vlaneseq }
 0x29d   :  { %2002 = vmatpush.xpose.msk.msrb.mxu2 %vm893_vm9, %v626_v5 }
 0x29e   :  { %v878_v7 = vshrl.u32 %v877_v56, 7 }
 0x2a2   :  { %2007 = vmatmul.msk.f32.vlgmr.msra.gmra.mxu3 %vm893_vm9, %v2373_v22  ;;  %v880_v22 = vand.u32 127, %v877_v56 }
 0x2a4   :  { %2001 = vmatmul.msk.f32.vlgmr.msra.gmra.mxu2 %vm893_vm9, %v2348_v53  ;;  %v884_v53 = vsel %vm883_vm10, 0.0, %v2149_v8  ;;  %vm881_vm11 = vcmp.gt.s32.totalorder %v880_v22, %v878_v7 }
 0x2a5   :  { %2008 = vmatpush.xpose.msk.msra.mxu2 %vm893_vm9, %v632_v6  ;;  %v887_v9 = vperm.slane %v884_v53, 0  ;;  %v882_v14 = vsel %vm881_vm11, -1e+30, %v2150_v11  ;;  %v886_v18 = vrot.slane %v884_v53, 1 }
 0x2a7   :  { %v891_v16 = vadd.f32 %v887_v9, %v882_v14  ;;  %v888_v28 = vperm.slane %v886_v18, 0 }
 0x2a9   :  { %v892_v32 = vadd.f32 %v888_v28, %v882_v14  ;;  %v2043_v14 = vunpack.i.h.bf16 %v2041_v62 }
 0x2ac   :  { %2003 = vmatmul.msk.f32.vlgmr.msrb.gmra.mxu2 %vm893_vm9, %v2376_v23 }
 0x2b4   :  { %2009 = vmatmul.msk.f32.vlgmr.msra.gmra.mxu2 %vm893_vm9, %v2367_v19 }
 0x313   :  { %v969_v17 = vpop.f32.mrf.mxu3 }
 0x314   :  { %v1104_v23 = vmul.f32 0.35355338, %v969_v17  ;;  %v2042_v17 = vunpack.i.l.bf16 %v2041_v62 }
 0x316   :  { %v1112_v25 = vadd.f32 %v1104_v23, %v891_v16  ;;  %v671_v23 = vrot.slane %v2043_v14, 4 }
 0x317   :  { %v917_v19 = vpop.f32.mrf.mxu2 }
 0x318   :  { %v1102_v26 = vmul.f32 0.35355338, %v917_v19  ;;  %v1124_v27 = vsel %vm893_vm9, %v1112_v25, -inf  ;;  %v659_v19 = vrot.slane %v2042_v17, 4 }
 0x319   :  { %1125 = vmax.xlane.f32.xlu0 %v1124_v27 }
 0x31a   :  { %v1110_v30 = vadd.f32 %v1102_v26, %v891_v16 }
 0x31c   :  { %v1118_v24 = vsel %vm893_vm9, %v1110_v30, -inf }
 0x31d   :  { %1119 = vmax.xlane.f32.xlu2 %v1118_v24  ;;  %v1047_v33 = vpop.f32.mrf.mxu3 }
 0x31e   :  { %v1107_v34 = vmul.f32 0.35355338, %v1047_v33 }
 0x31f   :  { %v943_v35 = vpop.f32.mrf.mxu2 }
 0x320   :  { %v1103_v36 = vmul.f32 0.35355338, %v943_v35  ;;  %v2487_v37 = vadd.f32 %v1107_v34, %v892_v32 }
 0x322   :  { %v1111_v38 = vadd.f32 %v1103_v36, %v891_v16  ;;  %v1133_v39 = vsel %vm893_vm9, %v2487_v37, -inf }
 0x323   :  { %1134 = vmax.xlane.f32.xlu1 %v1133_v39 }
 0x324   :  { %v1121_v41 = vsel %vm893_vm9, %v1111_v38, -inf }
 0x325   :  { %1122 = vmax.xlane.f32.xlu2 %v1121_v41  ;;  %v1073_v42 = vpop.f32.mrf.mxu3 }
 0x326   :  { %v1108_v43 = vmul.f32 0.35355338, %v1073_v42 }
 0x327   :  { %v995_v44 = vpop.f32.mrf.mxu2 }
 0x328   :  { %v1105_v45 = vmul.f32 0.35355338, %v995_v44  ;;  %v1116_v31 = vadd.f32 %v1108_v43, %v892_v32 }
 0x32a   :  { %v1113_v29 = vadd.f32 %v1105_v45, %v891_v16  ;;  %v1136_v46 = vsel %vm893_vm9, %v1116_v31, -inf }
 0x32c   :  { %v1127_v48 = vsel %vm893_vm9, %v1113_v29, -inf }
 0x32d   :  { %1128 = vmax.xlane.f32.xlu1 %v1127_v48  ;;  %1137 = vmax.xlane.f32.xlu2 %v1136_v46 }
 0x32f   :  { %v1021_v49 = vpop.f32.mrf.mxu2 }
 0x330   :  { %v1106_v50 = vmul.f32 0.35355338, %v1021_v49 }
 0x332   :  { %v1114_v51 = vadd.f32 %v1106_v50, %v892_v32 }
 0x334   :  { %v1130_v52 = vsel %vm893_vm9, %v1114_v51, -inf }
 0x335   :  { %1131 = vmax.xlane.f32.xlu1 %v1130_v52 }
 0x337   :  { %v1099_v54 = vpop.f32.mrf.mxu2 }
 0x338   :  { %v1109_v55 = vmul.f32 0.35355338, %v1099_v54 }
 0x33a   :  { %v2495_v58 = vadd.f32 %v1109_v55, %v892_v32 }
 0x33c   :  { %v1139_v60 = vsel %vm893_vm9, %v2495_v58, -inf }
 0x33d   :  { %1140 = vmax.xlane.f32.xlu0 %v1139_v60 }
 0x345   :  { %2045 = vrot.lane.b32.xlu2 %v2044_v61, %s2148_s15 }
 0x34e   :  { %2055 = vrot.lane.b32.xlu1 %v2054_v20, %s2148_s15 }
 0x351   :  { %2050 = vrot.lane.b32.xlu0 %v2049_v47, %s2148_s15 }
 0x38c   :  { %v1126_v2 = vpop.xlane.xlu0 %1125 }
 0x38d   :  { %v1144_v3 = vsub.f32 %v1112_v25, %v1126_v2 }
 0x38f   :  { %v1154_v4 = vmul.f32 1.442695, %v1144_v3 }
 0x390   :  { %v1120_v5 = vpop.xlane.xlu2 %1119 }
 0x391   :  { %2073 = vpow2.f32 %v1154_v4  ;;  %v1142_v0 = vsub.f32 %v1110_v30, %v1120_v5 }
 0x393   :  { %v1150_v59 = vmul.f32 1.442695, %v1142_v0 }
 0x395   :  { %2075 = vpow2.f32 %v1150_v59 }
 0x396   :  { %v2509_v13 = vpop.xlane.xlu1 %1134 }
 0x397   :  { %v2511_v6 = vpop.eup %2073  ;;  %v1147_v5 = vsub.f32 %v2487_v37, %v2509_v13 }
 0x398   :  { %v1123_v63 = vpop.xlane.xlu2 %1122  ;;  %v1172_v12 = vsel %vm893_vm9, %v2511_v6, 0.0 }
 0x399   :  { %v1143_v57 = vsub.f32 %v1111_v38, %v1123_v63  ;;  %1173 = vadd.xlane.f32.xlu2 %v1172_v12 }
 0x39b   :  { %v2515_v20 = vpop.eup %2075  ;;  %v1152_v40 = vmul.f32 1.442695, %v1143_v57 }
 0x39c   :  { %v1166_v56 = vsel %vm893_vm9, %v2515_v20, 0.0 }
 0x39d   :  { %2077 = vpow2.f32 %v1152_v40  ;;  %1167 = vadd.xlane.f32.xlu1 %v1166_v56 }
 0x3a0   :  { %v1129_v21 = vpop.xlane.xlu1 %1128  ;;  %v1138_v7 = vpop.xlane.xlu2 %1137 }
 0x3a1   :  { %v1145_v22 = vsub.f32 %v1113_v29, %v1129_v21  ;;  %v1148_v8 = vsub.f32 %v1116_v31, %v1138_v7 }
 0x3a3   :  { %v2519_v53 = vpop.eup %2077  ;;  %v1156_v9 = vmul.f32 1.442695, %v1145_v22  ;;  %v1162_v11 = vmul.f32 1.442695, %v1148_v8  ;;  %v1160_v22 = vmul.f32 1.442695, %v1147_v5 }
 0x3a4   :  { %v1169_v16 = vsel %vm893_vm9, %v2519_v53, 0.0 }
 0x3a5   :  { %2079 = vpow2.f32 %v1156_v9  ;;  %1170 = vadd.xlane.f32.xlu0 %v1169_v16 }
 0x3a6   :  { %2081 = vpow2.f32 %v1162_v11 }
 0x3a8   :  { %v2046_v18 = vpop.permute.xlu2 %2045  ;;  %v1132_v25 = vpop.xlane.xlu1 %1131 }
 0x3a9   :  { %v2048_v26 = vunpack.i.h.bf16 %v2046_v18  ;;  %v2047_v27 = vunpack.i.l.bf16 %v2046_v18  ;;  %v1146_v28 = vsub.f32 %v1114_v51, %v1132_v25 }
 0x3ab   :  { %v2523_v30 = vpop.eup %2079  ;;  %v669_v24 = vrot.slane %v2048_v26, 4  ;;  %v657_v32 = vrot.slane %v2047_v27, 4  ;;  %v660_v33 = vsel %vm169_vm8, %v2047_v27, %v659_v19  ;;  %v672_v34 = vsel %vm169_vm8, %v2048_v26, %v671_v23 }
 0x3ac   :  { %v2527_v35 = vpop.eup %2081  ;;  %v668_v36 = vperm.slane %v660_v33, %v2248_v1  ;;  %v680_v38 = vperm.slane %v672_v34, %v2248_v1  ;;  %v1158_v39 = vmul.f32 1.442695, %v1146_v28  ;;  %v1175_v41 = vsel %vm893_vm9, %v2523_v30, 0.0 }
 0x3ad   :  { %v658_v42 = vsel %vm169_vm8, %v657_v32, %v2042_v17  ;;  %v670_v43 = vsel %vm169_vm8, %v669_v24, %v2043_v14  ;;  %1176 = vadd.xlane.f32.xlu1 %v1175_v41  ;;  %v1184_v44 = vsel %vm893_vm9, %v2527_v35, 0.0 }
 0x3ae   :  { %v664_v45 = vperm.slane %v658_v42, %v2248_v1  ;;  %v676_v31 = vperm.slane %v670_v43, %v2248_v1  ;;  %v693_v29 = vrot.slane %v680_v38, 4  ;;  %v695_v46 = vrot.slane %v668_v36, 4  ;;  %1185 = vadd.xlane.f32.xlu0 %v1184_v44 }
 0x3af   :  { %2083 = vpow2.f32 %v1158_v39 }
 0x3b0   :  { %v681_v48 = vrot.slane %v676_v31, 4  ;;  %v683_v49 = vrot.slane %v664_v45, 4  ;;  %v694_v50 = vsel %vm169_vm8, %v693_v29, %v668_v36  ;;  %v696_v51 = vsel %vm169_vm8, %v680_v38, %v695_v46  ;;  %v1141_v52 = vpop.xlane.xlu0 %1140 }
 0x3b1   :  { %v700_v54 = vperm.slane %v694_v50, %v2264_v15  ;;  %v704_v55 = vperm.slane %v696_v51, %v2264_v15  ;;  %v1149_v60 = vsub.f32 %v2495_v58, %v1141_v52 }
 0x3b2   :  { %v682_v61 = vsel %vm169_vm8, %v681_v48, %v664_v45  ;;  %v684_v47 = vsel %vm169_vm8, %v676_v31, %v683_v49 }
 0x3b3   :  { %v688_v62 = vperm.slane %v682_v61, %v2264_v15  ;;  %v692_v2 = vperm.slane %v684_v47, %v2264_v15  ;;  %v709_v3 = vrot.slane %v700_v54, 4  ;;  %v711_v4 = vrot.slane %v704_v55, 4 }
 0x3b4   :  { %v1164_v0 = vmul.f32 1.442695, %v1149_v60 }
 0x3b5   :  { %v2550_v59 = vpop.eup %2083  ;;  %v707_v63 = vrot.slane %v692_v2, 4  ;;  %v712_v12 = vsel %vm169_vm8, 0.0, %v711_v4  ;;  %v705_v58 = vrot.slane %v688_v62, 4  ;;  %v780_v56 = vsel %vm169_vm8, %v711_v4, %v700_v54 }
 0x3b6   :  { %v785_v57 = vrot.slane %v712_v12, 4  ;;  %2085 = vpow2.f32 %v1164_v0  ;;  %v1178_v40 = vsel %vm893_vm9, %v2550_v59, 0.0  ;;  %v710_v7 = vsel %vm169_vm8, 0.0, %v709_v3 }
 0x3b7   :  { %1179 = vadd.xlane.f32.xlu1 %v1178_v40  ;;  %v708_v21 = vsel %vm169_vm8, 0.0, %v707_v63  ;;  %v769_v37 = vsel %vm169_vm8, %v707_v63, %v688_v62  ;;  %v784_v13 = vperm.slane %v780_v56, %v2248_v1  ;;  %v706_v14 = vsel %vm169_vm8, 0.0, %v705_v58 }
 0x3b8   :  { %v773_v8 = vperm.slane %v769_v37, %v2248_v1  ;;  %v774_v9 = vrot.slane %v708_v21, 4  ;;  %v786_v11 = vsel %vm169_vm8, %v785_v57, %v710_v7  ;;  %2087 = vpow2.f32 %v1160_v22 }
 0x3b9   :  { %v790_v16 = vperm.slane %v786_v11, %v2248_v1  ;;  %v805_v17 = vrot.slane %v784_v13, 4 }
 0x3ba   :  { %v775_v23 = vsel %vm169_vm8, %v774_v9, %v706_v14  ;;  %v793_v18 = vrot.slane %v773_v8, 4 }
 0x3bb   :  { %v779_v25 = vperm.slane %v775_v23, %v2248_v1  ;;  %v803_v19 = vrot.slane %v790_v16, 4  ;;  %v806_v26 = vsel %vm169_vm8, %v790_v16, %v805_v17 }
 0x3bc   :  { %v2567_v27 = vpop.eup %2085  ;;  %v814_v28 = vperm.slane %v806_v26, %v2264_v15 }
 0x3bd   :  { %v1187_v24 = vsel %vm893_vm9, %v2567_v27, 0.0  ;;  %v791_v32 = vrot.slane %v779_v25, 4  ;;  %v794_v33 = vsel %vm169_vm8, %v779_v25, %v793_v18  ;;  %v804_v34 = vsel %vm169_vm8, %v803_v19, %v784_v13 }
 0x3be   :  { %1188 = vadd.xlane.f32.xlu2 %v1187_v24  ;;  %v802_v36 = vperm.slane %v794_v33, %v2264_v15  ;;  %v819_v38 = vrot.slane %v814_v28, 4  ;;  %v810_v39 = vperm.slane %v804_v34, %v2264_v15  ;;  %v2579_v48 = vpop.eup %2087 }
 0x3bf   :  { %v792_v41 = vsel %vm169_vm8, %v791_v32, %v773_v8  ;;  %v1181_v62 = vsel %vm893_vm9, %v2579_v48, 0.0 }
 0x3c0   :  { %v2056_v42 = vpop.permute.xlu1 %2055  ;;  %v820_v43 = vsel %vm169_vm8, %v819_v38, %v802_v36  ;;  %v821_v44 = vrot.slane %v802_v36, 4  ;;  %v798_v45 = vperm.slane %v792_v41, %v2264_v15  ;;  %v815_v31 = vrot.slane %v810_v39, 4 }
 0x3c1   :  { %v2058_v29 = vunpack.i.h.bf16 %v2056_v42  ;;  %v2057_v46 = vunpack.i.l.bf16 %v2056_v42  ;;  %1374 = vmatpush.msra.mxu1 %v820_v43 }
 0x3c2   :  { %v816_v49 = vsel %vm169_vm8, %v815_v31, %v798_v45  ;;  %v822_v50 = vsel %vm169_vm8, %v814_v28, %v821_v44  ;;  %v817_v51 = vrot.slane %v798_v45, 4 }
 0x3c3   :  { %v2051_v52 = vpop.permute.xlu0 %2050  ;;  %v725_v54 = vrot.slane %v2058_v29, 4  ;;  %v713_v55 = vrot.slane %v2057_v46, 4  ;;  %1328 = vmatpush.msrb.mxu3 %v816_v49  ;;  %1397 = vmatpush.msrb.mxu2 %v822_v50 }
 0x3c4   :  { %v2053_v60 = vunpack.i.h.bf16 %v2051_v52  ;;  %v2052_v61 = vunpack.i.l.bf16 %v2051_v52  ;;  %v818_v47 = vsel %vm169_vm8, %v810_v39, %v817_v51 }
 0x3c5   :  { %1351 = vmatpush.msrb.mxu0 %v818_v47 }
 0x3c6   :  { %v727_v2 = vrot.slane %v2053_v60, 4  ;;  %v715_v3 = vrot.slane %v2052_v61, 4  ;;  %v714_v4 = vsel %vm169_vm8, %v713_v55, %v2052_v61  ;;  %v726_v5 = vsel %vm169_vm8, %v725_v54, %v2053_v60  ;;  %1182 = vadd.xlane.f32.xlu2 %v1181_v62 }
 0x3c7   :  { %v720_v0 = vperm.slane %v714_v4, %v2248_v1  ;;  %v732_v63 = vperm.slane %v726_v5, %v2248_v1 }
 0x3c8   :  { %v716_v12 = vsel %vm169_vm8, %v2057_v46, %v715_v3  ;;  %v728_v58 = vsel %vm169_vm8, %v2058_v29, %v727_v2 }
 0x3c9   :  { %v724_v57 = vperm.slane %v716_v12, %v2248_v1  ;;  %v736_v40 = vperm.slane %v728_v58, %v2248_v1  ;;  %v737_v56 = vrot.slane %v732_v63, 4  ;;  %v739_v21 = vrot.slane %v720_v0, 4 }
 0x3cb   :  { %v738_v7 = vsel %vm169_vm8, %v737_v56, %v720_v0  ;;  %v740_v37 = vsel %vm169_vm8, %v732_v63, %v739_v21  ;;  %v749_v13 = vrot.slane %v736_v40, 4  ;;  %v751_v22 = vrot.slane %v724_v57, 4 }
 0x3cc   :  { %v744_v8 = vperm.slane %v738_v7, %v2264_v15  ;;  %v748_v9 = vperm.slane %v740_v37, %v2264_v15 }
 0x3cd   :  { %v750_v11 = vsel %vm169_vm8, %v749_v13, %v724_v57  ;;  %v752_v14 = vsel %vm169_vm8, %v736_v40, %v751_v22 }
 0x3ce   :  { %v756_v16 = vperm.slane %v750_v11, %v2264_v15  ;;  %v760_v17 = vperm.slane %v752_v14, %v2264_v15  ;;  %v763_v23 = vrot.slane %v748_v9, 4  ;;  %v761_v18 = vrot.slane %v744_v8, 4 }
 0x3d0   :  { %v765_v25 = vrot.slane %v756_v16, 4  ;;  %v767_v19 = vrot.slane %v760_v17, 4  ;;  %v764_v26 = vsel %vm169_vm8, 0.0, %v763_v23  ;;  %v823_v28 = vsel %vm169_vm8, %v763_v23, %v744_v8 }
 0x3d1   :  { %v828_v24 = vrot.slane %v764_v26, 4  ;;  %v762_v33 = vsel %vm169_vm8, 0.0, %v761_v18  ;;  %v827_v34 = vperm.slane %v823_v28, %v2248_v1 }
 0x3d2   :  { %v768_v32 = vsel %vm169_vm8, 0.0, %v767_v19  ;;  %v834_v36 = vsel %vm169_vm8, %v767_v19, %v756_v16  ;;  %v766_v42 = vsel %vm169_vm8, 0.0, %v765_v25 }
 0x3d3   :  { %v839_v38 = vrot.slane %v768_v32, 4  ;;  %v829_v39 = vsel %vm169_vm8, %v828_v24, %v762_v33  ;;  %v838_v41 = vperm.slane %v834_v36, %v2248_v1  ;;  %v847_v44 = vrot.slane %v827_v34, 4 }
 0x3d4   :  { %v833_v43 = vperm.slane %v829_v39, %v2248_v1 }
 0x3d5   :  { %v840_v45 = vsel %vm169_vm8, %v839_v38, %v766_v42  ;;  %v859_v31 = vrot.slane %v838_v41, 4 }
 0x3d6   :  { %v844_v29 = vperm.slane %v840_v45, %v2248_v1  ;;  %v845_v46 = vrot.slane %v833_v43, 4  ;;  %v848_v49 = vsel %vm169_vm8, %v833_v43, %v847_v44 }
 0x3d7   :  { %v856_v50 = vperm.slane %v848_v49, %v2264_v15 }
 0x3d8   :  { %v857_v51 = vrot.slane %v844_v29, 4  ;;  %v860_v52 = vsel %vm169_vm8, %v844_v29, %v859_v31  ;;  %v846_v54 = vsel %vm169_vm8, %v845_v46, %v827_v34 }
 0x3d9   :  { %v868_v55 = vperm.slane %v860_v52, %v2264_v15  ;;  %v875_v60 = vrot.slane %v856_v50, 4  ;;  %v852_v61 = vperm.slane %v846_v54, %v2264_v15 }
 0x3da   :  { %v858_v47 = vsel %vm169_vm8, %v857_v51, %v838_v41 }
 0x3db   :  { %v873_v62 = vrot.slane %v868_v55, 4  ;;  %v876_v2 = vsel %vm169_vm8, %v868_v55, %v875_v60  ;;  %v864_v3 = vperm.slane %v858_v47, %v2264_v15  ;;  %v871_v4 = vrot.slane %v852_v61, 4 }
 0x3dc   :  { %1489 = vmatpush.msra.mxu2 %v876_v2 }
 0x3dd   :  { %v874_v5 = vsel %vm169_vm8, %v873_v62, %v856_v50  ;;  %v869_v0 = vrot.slane %v864_v3, 4  ;;  %v872_v63 = vsel %vm169_vm8, %v864_v3, %v871_v4 }
 0x3de   :  { %1466 = vmatpush.msrb.mxu1 %v874_v5  ;;  %1443 = vmatpush.msra.mxu0 %v872_v63 }
 0x3df   :  { %v870_v12 = vsel %vm169_vm8, %v869_v0, %v852_v61 }
 0x3e0   :  { %1420 = vmatpush.msra.mxu3 %v870_v12 }
 0x40c   :  { %v1174_v58 = vpop.xlane.xlu2 %1173 }
 0x40d   :  { %2089 = vrcp.f32 %v1174_v58  ;;  %v1231_v37 = vand.u32 2147483648, %v1174_v58  ;;  %v1229_v13 = vand.u32 2147483647, %v1174_v58  ;;  %vm1225_vm13 = vweird.f32 %v1174_v58 }
 0x40f   :  { %v1232_v16 = vor.u32 1.1754944e-38, %v1231_v37  ;;  %vm1230_vm15 = vcmp.eq.f32.partialorder %v1229_v13, 8.507059e+37 }
 0x410   :  { %v1168_v57 = vpop.xlane.xlu1 %1167 }
 0x411   :  { %2091 = vrcp.f32 %v1168_v57  ;;  %v1201_v17 = vand.u32 2147483648, %v1168_v57  ;;  %v1199_v18 = vand.u32 2147483647, %v1168_v57  ;;  %vm1195_vm2 = vweird.f32 %v1168_v57 }
 0x413   :  { %v2090_v40 = vpop.eup %2089  ;;  %v1202_v32 = vor.u32 1.1754944e-38, %v1201_v17  ;;  %vm1200_vm4 = vcmp.eq.f32.partialorder %v1199_v18, 8.507059e+37 }
 0x414   :  { %v1221_v56 = vmul.f32 %v2090_v40, %v1174_v58  ;;  %vm1226_vm12 = vweird.f32 %v2090_v40 }
 0x415   :  { %vm1227_vm14 = vmor %vm1225_vm13, %vm1226_vm12 }
 0x416   :  { %v1222_v21 = vsub.f32 1.0, %v1221_v56 }
 0x417   :  { %v2092_v7 = vpop.eup %2091 }
 0x418   :  { %v1223_v22 = vmul.f32 %v2090_v40, %v1222_v21  ;;  %v1191_v8 = vmul.f32 %v2092_v7, %v1168_v57  ;;  %v1171_v9 = vpop.xlane.xlu0 %1170  ;;  %vm1196_vm1 = vweird.f32 %v2092_v7 }
 0x419   :  { %2093 = vrcp.f32 %v1171_v9  ;;  %vm1197_vm3 = vmor %vm1195_vm2, %vm1196_vm1  ;;  %v1216_v42 = vand.u32 2147483648, %v1171_v9  ;;  %vm1210_vm6 = vweird.f32 %v1171_v9 }
 0x41a   :  { %v1192_v11 = vsub.f32 1.0, %v1191_v8  ;;  %v1224_v14 = vadd.f32 %v2090_v40, %v1223_v22 }
 0x41b   :  { %v1217_v29 = vor.u32 1.1754944e-38, %v1216_v42 }
 0x41c   :  { %v1193_v23 = vmul.f32 %v2092_v7, %v1192_v11  ;;  %v1228_v25 = vsel %vm1227_vm14, %v2090_v40, %v1224_v14 }
 0x41d   :  { %v1233_v19 = vsel %vm1230_vm15, %v1232_v16, %v1228_v25 }
 0x41e   :  { %v1194_v26 = vadd.f32 %v2092_v7, %v1193_v23  ;;  %v1234_v28 = vmul.f32 %v2511_v6, %v1233_v19  ;;  %v1214_v6 = vand.u32 2147483647, %v1171_v9 }
 0x41f   :  { %v2094_v24 = vpop.eup %2093 }
 0x420   :  { %v1198_v33 = vsel %vm1197_vm3, %v2092_v7, %v1194_v26  ;;  %v1206_v34 = vmul.f32 %v2094_v24, %v1171_v9  ;;  %2012 = vmatmul.msk.f32.vlgmr.msra.gmra.mxu1 %vm893_vm9, %v1234_v28  ;;  %v1177_v36 = vpop.xlane.xlu1 %1176  ;;  %vm1211_vm5 = vweird.f32 %v2094_v24  ;;  %vm1215_vm10 = vcmp.eq.f32.partialorder %v1214_v6, 8.507059e+37 }
 0x421   :  { %v1203_v38 = vsel %vm1200_vm4, %v1202_v32, %v1198_v33  ;;  %2095 = vrcp.f32 %v1177_v36  ;;  %v1186_v39 = vpop.xlane.xlu0 %1185  ;;  %vm1212_vm7 = vmor %vm1210_vm6, %vm1211_vm5  ;;  %v1246_v60 = vand.u32 2147483648, %v1177_v36  ;;  %v1244_v62 = vand.u32 2147483647, %v1177_v36 }
 0x422   :  { %v1207_v41 = vsub.f32 1.0, %v1206_v34  ;;  %2097 = vrcp.f32 %v1186_v39  ;;  %v1204_v43 = vmul.f32 %v2515_v20, %v1203_v38  ;;  %v1291_v3 = vand.u32 2147483648, %v1186_v39 }
 0x423   :  { %vm1240_vm13 = vweird.f32 %v1177_v36  ;;  %v1289_v5 = vand.u32 2147483647, %v1186_v39  ;;  %v1247_v0 = vor.u32 1.1754944e-38, %v1246_v60  ;;  %vm1285_vm15 = vweird.f32 %v1186_v39 }
 0x424   :  { %v1208_v44 = vmul.f32 %v2094_v24, %v1207_v41  ;;  %2010 = vmatmul.msk.f32.vlgmr.msrb.gmra.mxu3 %vm893_vm9, %v1204_v43  ;;  %vm1245_vm1 = vcmp.eq.f32.partialorder %v1244_v62, 8.507059e+37  ;;  %v1292_v57 = vor.u32 1.1754944e-38, %v1291_v3 }
 0x425   :  { %vm1290_vm3 = vcmp.eq.f32.partialorder %v1289_v5, 8.507059e+37 }
 0x426   :  { %v1209_v45 = vadd.f32 %v2094_v24, %v1208_v44 }
 0x427   :  { %v2096_v31 = vpop.eup %2095 }
 0x428   :  { %v2098_v46 = vpop.eup %2097  ;;  %v1236_v49 = vmul.f32 %v2096_v31, %v1177_v36  ;;  %v1213_v50 = vsel %vm1212_vm7, %v2094_v24, %v1209_v45  ;;  %vm1241_vm11 = vweird.f32 %v2096_v31 }
 0x429   :  { %v1281_v51 = vmul.f32 %v2098_v46, %v1186_v39  ;;  %v1218_v52 = vsel %vm1215_vm10, %v1217_v29, %v1213_v50  ;;  %vm1286_vm12 = vweird.f32 %v2098_v46  ;;  %vm1242_vm14 = vmor %vm1240_vm13, %vm1241_vm11 }
 0x42a   :  { %v1237_v54 = vsub.f32 1.0, %v1236_v49  ;;  %v1180_v55 = vpop.xlane.xlu1 %1179  ;;  %v1219_v20 = vmul.f32 %v2519_v53, %v1218_v52  ;;  %vm1287_vm2 = vmor %vm1285_vm15, %vm1286_vm12 }
 0x42b   :  { %v1282_v61 = vsub.f32 1.0, %v1281_v51  ;;  %2099 = vrcp.f32 %v1180_v55  ;;  %v1261_v8 = vand.u32 2147483648, %v1180_v55  ;;  %v1259_v11 = vand.u32 2147483647, %v1180_v55 }
 0x42c   :  { %v1238_v47 = vmul.f32 %v2096_v31, %v1237_v54  ;;  %2011 = vmatmul.msk.f32.vlgmr.msrb.gmra.mxu0 %vm893_vm9, %v1219_v20  ;;  %vm1255_vm5 = vweird.f32 %v1180_v55 }
 0x42d   :  { %v1283_v2 = vmul.f32 %v2098_v46, %v1282_v61  ;;  %v1262_v17 = vor.u32 1.1754944e-38, %v1261_v8  ;;  %vm1260_vm7 = vcmp.eq.f32.partialorder %v1259_v11, 8.507059e+37 }
 0x42e   :  { %v1239_v4 = vadd.f32 %v2096_v31, %v1238_v47 }
 0x42f   :  { %v1284_v63 = vadd.f32 %v2098_v46, %v1283_v2 }
 0x430   :  { %v1243_v12 = vsel %vm1242_vm14, %v2096_v31, %v1239_v4 }
 0x431   :  { %v2100_v53 = vpop.eup %2099  ;;  %v1248_v58 = vsel %vm1245_vm1, %v1247_v0, %v1243_v12  ;;  %v1189_v40 = vpop.xlane.xlu2 %1188  ;;  %v1288_v56 = vsel %vm1287_vm2, %v2098_v46, %v1284_v63 }
 0x432   :  { %v1251_v21 = vmul.f32 %v2100_v53, %v1180_v55  ;;  %2101 = vrcp.f32 %v1189_v40  ;;  %v1249_v7 = vmul.f32 %v2523_v30, %v1248_v58  ;;  %v1293_v37 = vsel %vm1290_vm3, %v1292_v57, %v1288_v56 }
 0x433   :  { %v1294_v22 = vmul.f32 %v2527_v35, %v1293_v37  ;;  %vm1256_vm4 = vweird.f32 %v2100_v53  ;;  %v1306_v19 = vand.u32 2147483648, %v1189_v40  ;;  %v1304_v24 = vand.u32 2147483647, %v1189_v40 }
 0x434   :  { %v1252_v13 = vsub.f32 1.0, %v1251_v21  ;;  %2013 = vmatmul.msk.f32.vlgmr.msrb.gmra.mxu2 %vm893_vm9, %v1249_v7  ;;  %vm1257_vm6 = vmor %vm1255_vm5, %vm1256_vm4  ;;  %vm1300_vm11 = vweird.f32 %v1189_v40  ;;  %vm1743_vm3 = vcmask 195584  }
 0x435   :  { %2016 = vmatmul.msk.f32.vlgmr.msrb.gmra.mxu1 %vm893_vm9, %v1294_v22  ;;  %v1307_v34 = vor.u32 1.1754944e-38, %v1306_v19  ;;  %vm1305_vm13 = vcmp.eq.f32.partialorder %v1304_v24, 8.507059e+37 }
 0x436   :  { %v1253_v9 = vmul.f32 %v2100_v53, %v1252_v13 }
 0x438   :  { %v2102_v14 = vpop.eup %2101  ;;  %v1254_v16 = vadd.f32 %v2100_v53, %v1253_v9 }
 0x439   :  { %v1296_v23 = vmul.f32 %v2102_v14, %v1189_v40  ;;  %v1183_v18 = vpop.xlane.xlu2 %1182  ;;  %vm1301_vm10 = vweird.f32 %v2102_v14 }
 0x43a   :  { %v1258_v30 = vsel %vm1257_vm6, %v2100_v53, %v1254_v16  ;;  %2103 = vrcp.f32 %v1183_v18  ;;  %vm1302_vm12 = vmor %vm1300_vm11, %vm1301_vm10  ;;  %v1276_v43 = vand.u32 2147483648, %v1183_v18  ;;  %vm1270_vm15 = vweird.f32 %v1183_v18 }
 0x43b   :  { %v1263_v25 = vsel %vm1260_vm7, %v1262_v17, %v1258_v30  ;;  %v1297_v35 = vsub.f32 1.0, %v1296_v23 }
 0x43c   :  { %v1264_v26 = vmul.f32 %v2550_v59, %v1263_v25  ;;  %v1274_v59 = vand.u32 2147483647, %v1183_v18  ;;  %v1277_v45 = vor.u32 1.1754944e-38, %v1276_v43 }
 0x43d   :  { %v1298_v28 = vmul.f32 %v2102_v14, %v1297_v35 }
 0x43e   :  { %2014 = vmatmul.msk.f32.vlgmr.msra.gmra.mxu3 %vm893_vm9, %v1264_v26  ;;  %vm1275_vm2 = vcmp.eq.f32.partialorder %v1274_v59, 8.507059e+37 }
 0x43f   :  { %v1299_v32 = vadd.f32 %v2102_v14, %v1298_v28 }
 0x440   :  { %v2104_v33 = vpop.eup %2103 }
 0x441   :  { %v1303_v36 = vsel %vm1302_vm12, %v2102_v14, %v1299_v32  ;;  %v1266_v38 = vmul.f32 %v2104_v33, %v1183_v18  ;;  %vm1271_vm14 = vweird.f32 %v2104_v33 }
 0x442   :  { %v1308_v39 = vsel %vm1305_vm13, %v1307_v34, %v1303_v36  ;;  %vm1272_vm1 = vmor %vm1270_vm15, %vm1271_vm14 }
 0x443   :  { %v1267_v41 = vsub.f32 1.0, %v1266_v38  ;;  %v1309_v42 = vmul.f32 %v2567_v27, %v1308_v39 }
 0x445   :  { %v1268_v44 = vmul.f32 %v2104_v33, %v1267_v41  ;;  %2017 = vmatmul.msk.f32.vlgmr.msra.gmra.mxu2 %vm893_vm9, %v1309_v42 }
 0x447   :  { %v1269_v6 = vadd.f32 %v2104_v33, %v1268_v44 }
 0x449   :  { %v1273_v31 = vsel %vm1272_vm1, %v2104_v33, %v1269_v6 }
 0x44a   :  { %v1278_v29 = vsel %vm1275_vm2, %v1277_v45, %v1273_v31 }
 0x44b   :  { %v1279_v46 = vmul.f32 %v2579_v48, %v1278_v29 }
 0x44d   :  { %2015 = vmatmul.msk.f32.vlgmr.msra.gmra.mxu0 %vm893_vm9, %v1279_v46 }
 0x49d   :  { %v1376_v27 = vpop.f32.mrf.mxu1 }
 0x49e   :  { %v1494_v51 = vrot.slane %v1376_v27, 4 }
 0x4a7   :  { %v1330_v49 = vpop.f32.mrf.mxu3 }
 0x4a8   :  { %v1496_v50 = vrot.slane %v1330_v49, 4  ;;  %v1495_v55 = vsel %vm169_vm8, %v1494_v51, %v1330_v49 }
 0x4a9   :  { %v1353_v54 = vpop.f32.mrf.mxu0  ;;  %v1501_v61 = vperm.slane %v1495_v55, %v2248_v1 }
 0x4aa   :  { %v1497_v52 = vsel %vm169_vm8, %v1376_v27, %v1496_v50  ;;  %v1508_v60 = vrot.slane %v1353_v54, 4 }
 0x4ab   :  { %v1505_v20 = vperm.slane %v1497_v52, %v2248_v1  ;;  %v1520_v5 = vrot.slane %v1501_v61, 4 }
 0x4ad   :  { %v1532_v2 = vrot.slane %v1505_v20, 4 }
 0x4b2   :  { %v1468_v53 = vpop.f32.mrf.mxu1 }
 0x4b3   :  { %v1550_v13 = vrot.slane %v1468_v53, 4 }
 0x4b7   :  { %v1399_v47 = vpop.f32.mrf.mxu2 }
 0x4b8   :  { %v1506_v62 = vrot.slane %v1399_v47, 4  ;;  %v1509_v48 = vsel %vm169_vm8, %v1399_v47, %v1508_v60 }
 0x4b9   :  { %v1517_v3 = vperm.slane %v1509_v48, %v2248_v1 }
 0x4ba   :  { %v1507_v4 = vsel %vm169_vm8, %v1506_v62, %v1353_v54 }
 0x4bb   :  { %v1513_v0 = vperm.slane %v1507_v4, %v2248_v1  ;;  %v1530_v63 = vrot.slane %v1517_v3, 4  ;;  %v1533_v12 = vsel %vm169_vm8, %v1517_v3, %v1532_v2 }
 0x4bc   :  { %v1541_v58 = vperm.slane %v1533_v12, %v2264_v15 }
 0x4bd   :  { %v1518_v57 = vrot.slane %v1513_v0, 4  ;;  %v1521_v40 = vsel %vm169_vm8, %v1513_v0, %v1520_v5  ;;  %v1531_v56 = vsel %vm169_vm8, %v1530_v63, %v1505_v20 }
 0x4be   :  { %v1529_v21 = vperm.slane %v1521_v40, %v2264_v15  ;;  %v1537_v7 = vperm.slane %v1531_v56, %v2264_v15  ;;  %v1548_v37 = vrot.slane %v1541_v58, 4 }
 0x4bf   :  { %v1519_v22 = vsel %vm169_vm8, %v1518_v57, %v1501_v61 }
 0x4c0   :  { %v1525_v8 = vperm.slane %v1519_v22, %v2264_v15  ;;  %v1544_v9 = vrot.slane %v1529_v21, 4  ;;  %v1546_v11 = vrot.slane %v1537_v7, 4  ;;  %v1549_v14 = vsel %vm169_vm8, 0.0, %v1548_v37 }
 0x4c1   :  { %v1422_v16 = vpop.f32.mrf.mxu3  ;;  %v1617_v17 = vsel %vm169_vm8, %v1548_v37, %v1537_v7  ;;  %v1622_v23 = vrot.slane %v1549_v14, 4 }
 0x4c2   :  { %v1551_v18 = vsel %vm169_vm8, %v1550_v13, %v1422_v16  ;;  %v1552_v30 = vrot.slane %v1422_v16, 4  ;;  %v1542_v25 = vrot.slane %v1525_v8, 4  ;;  %v1545_v35 = vsel %vm169_vm8, 0.0, %v1544_v9 }
 0x4c3   :  { %v1547_v19 = vsel %vm169_vm8, 0.0, %v1546_v11  ;;  %v1621_v26 = vperm.slane %v1617_v17, %v2248_v1  ;;  %v1611_v28 = vrot.slane %v1545_v35, 4  ;;  %v1606_v24 = vsel %vm169_vm8, %v1544_v9, %v1525_v8 }
 0x4c4   :  { %v1553_v32 = vsel %vm169_vm8, %v1468_v53, %v1552_v30  ;;  %v1543_v33 = vsel %vm169_vm8, 0.0, %v1542_v25  ;;  %v1610_v34 = vperm.slane %v1606_v24, %v2248_v1  ;;  %v1623_v36 = vsel %vm169_vm8, %v1622_v23, %v1547_v19 }
 0x4c5   :  { %v1557_v38 = vperm.slane %v1551_v18, %v2248_v1  ;;  %v1612_v39 = vsel %vm169_vm8, %v1611_v28, %v1543_v33  ;;  %v1627_v41 = vperm.slane %v1623_v36, %v2248_v1  ;;  %v1642_v42 = vrot.slane %v1621_v26, 4 }
 0x4c6   :  { %v1616_v43 = vperm.slane %v1612_v39, %v2248_v1  ;;  %v1630_v44 = vrot.slane %v1610_v34, 4  ;;  %v1561_v59 = vperm.slane %v1553_v32, %v2248_v1 }
 0x4c7   :  { %v1643_v45 = vsel %vm169_vm8, %v1627_v41, %v1642_v42  ;;  %v1640_v31 = vrot.slane %v1627_v41, 4  ;;  %v1576_v27 = vrot.slane %v1557_v38, 4 }
 0x4c8   :  { %v1491_v6 = vpop.f32.mrf.mxu2  ;;  %v1631_v46 = vsel %vm169_vm8, %v1616_v43, %v1630_v44  ;;  %v1651_v49 = vperm.slane %v1643_v45, %v2264_v15  ;;  %v1628_v50 = vrot.slane %v1616_v43, 4  ;;  %v1588_v3 = vrot.slane %v1561_v59, 4 }
 0x4c9   :  { %v1562_v29 = vrot.slane %v1491_v6, 4  ;;  %v1639_v52 = vperm.slane %v1631_v46, %v2264_v15  ;;  %v1641_v54 = vsel %vm169_vm8, %v1640_v31, %v1621_v26 }
 0x4ca   :  { %v1445_v51 = vpop.f32.mrf.mxu0  ;;  %v1656_v60 = vrot.slane %v1651_v49, 4  ;;  %v1629_v61 = vsel %vm169_vm8, %v1628_v50, %v1610_v34  ;;  %v1647_v2 = vperm.slane %v1641_v54, %v2264_v15 }
 0x4cb   :  { %v1563_v55 = vsel %vm169_vm8, %v1562_v29, %v1445_v51  ;;  %v1564_v20 = vrot.slane %v1445_v51, 4  ;;  %v1658_v62 = vrot.slane %v1639_v52, 4  ;;  %v1635_v48 = vperm.slane %v1629_v61, %v2264_v15  ;;  %v35_v61 = vld [vmem:[%s2871_s2 + $0x58] sm:$0xff] }
 0x4cc   :  { %v1569_v47 = vperm.slane %v1563_v55, %v2248_v1  ;;  %v1657_v5 = vsel %vm169_vm8, %v1656_v60, %v1639_v52  ;;  %v1652_v57 = vrot.slane %v1647_v2, 4  ;;  %1765 = vmatpush.msrb.mxu3 %v35_v61 }
 0x4cd   :  { %v1565_v4 = vsel %vm169_vm8, %v1491_v6, %v1564_v20  ;;  %1724 = vrot.lane.b32.xlu2 %v1657_v5, %s2151_s1  ;;  %v1659_v53 = vsel %vm169_vm8, %v1651_v49, %v1658_v62  ;;  %v1654_v40 = vrot.slane %v1635_v48, 4  ;;  %v32_v62 = vld [vmem:[%s2871_s2 + $0x10] sm:$0xff] }
 0x4ce   :  { %v1573_v0 = vperm.slane %v1565_v4, %v2248_v1  ;;  %v1574_v63 = vrot.slane %v1569_v47, 4  ;;  %v1577_v12 = vsel %vm169_vm8, %v1569_v47, %v1576_v27  ;;  %1732 = vrot.lane.b32.xlu1 %v1659_v53, %s2152_s18  ;;  %v1653_v11 = vsel %vm169_vm8, %v1652_v57, %v1635_v48  ;;  %v33_v47 = vld [vmem:[%s2871_s2 + $0x28] sm:$0xff] }
 0x4cf   :  { %v1585_v58 = vperm.slane %v1577_v12, %v2264_v15  ;;  %v1655_v8 = vsel %vm169_vm8, %v1647_v2, %v1654_v40 }
 0x4d0   :  { %v1575_v56 = vsel %vm169_vm8, %v1574_v63, %v1557_v38  ;;  %v1586_v21 = vrot.slane %v1573_v0, 4  ;;  %v1589_v7 = vsel %vm169_vm8, %v1573_v0, %v1588_v3  ;;  %1716 = vrot.lane.b32.xlu0 %v1655_v8, %s2153_s19 }
 0x4d1   :  { %v1581_v37 = vperm.slane %v1575_v56, %v2264_v15  ;;  %v1597_v13 = vperm.slane %v1589_v7, %v2264_v15  ;;  %v1600_v22 = vrot.slane %v1585_v58, 4  ;;  %v2062_v56 = vld [vmem:[%s2873_s4 + $0x6] ss:$0 sm:$0xff] }
 0x4d2   :  { %v1587_v9 = vsel %vm169_vm8, %v1586_v21, %v1561_v59 }
 0x4d3   :  { %v1593_v14 = vperm.slane %v1587_v9, %v2264_v15  ;;  %v1598_v16 = vrot.slane %v1581_v37, 4  ;;  %v1601_v17 = vsel %vm169_vm8, 0.0, %v1600_v22  ;;  %v1604_v23 = vrot.slane %v1597_v13, 4 }
 0x4d4   :  { %v1660_v18 = vsel %vm169_vm8, %v1600_v22, %v1581_v37  ;;  %v1665_v30 = vrot.slane %v1601_v17, 4  ;;  %v2113_v37 = vld [vmem:[%s2869_s0] sm:$0xff] }
 0x4d5   :  { %v1599_v25 = vsel %vm169_vm8, 0.0, %v1598_v16  ;;  %v1602_v35 = vrot.slane %v1593_v14, 4  ;;  %v1605_v19 = vsel %vm169_vm8, 0.0, %v1604_v23  ;;  %v1664_v26 = vperm.slane %v1660_v18, %v2248_v1 }
 0x4d6   :  { %v1676_v28 = vrot.slane %v1605_v19, 4  ;;  %v1666_v24 = vsel %vm169_vm8, %v1665_v30, %v1599_v25  ;;  %v1671_v32 = vsel %vm169_vm8, %v1604_v23, %v1593_v14 }
 0x4d7   :  { %v1603_v33 = vsel %vm169_vm8, 0.0, %v1602_v35  ;;  %v1670_v34 = vperm.slane %v1666_v24, %v2248_v1  ;;  %v1675_v36 = vperm.slane %v1671_v32, %v2248_v1  ;;  %v1684_v38 = vrot.slane %v1664_v26, 4 }
 0x4d8   :  { %v1677_v39 = vsel %vm169_vm8, %v1676_v28, %v1603_v33 }
 0x4d9   :  { %v1681_v41 = vperm.slane %v1677_v39, %v2248_v1  ;;  %v1685_v42 = vsel %vm169_vm8, %v1670_v34, %v1684_v38  ;;  %v1696_v43 = vrot.slane %v1675_v36, 4  ;;  %v1682_v44 = vrot.slane %v1670_v34, 4  ;;  %v27_v34 = vld [vmem:[%s2871_s2 + $0x48] sm:$0xff]  ;;  %v26_v38 = vld [vmem:[%s2871_s2 + $0x30] sm:$0xff]  ;;  %v25_v39 = vld [vmem:[%s2871_s2 + $0x18] sm:$0xff] }
 0x4da   :  { %v1693_v59 = vperm.slane %v1685_v42, %v2264_v15  ;;  %1847 = vmatpush.msrb.mxu0 %v27_v34 }
 0x4db   :  { %v1697_v6 = vsel %vm169_vm8, %v1681_v41, %v1696_v43  ;;  %v1683_v45 = vsel %vm169_vm8, %v1682_v44, %v1664_v26  ;;  %v1694_v31 = vrot.slane %v1681_v41, 4  ;;  %v24_v41 = vld [vmem:[%s2871_s2] sm:$0xff] }
 0x4dc   :  { %v1705_v29 = vperm.slane %v1697_v6, %v2264_v15  ;;  %v1712_v46 = vrot.slane %v1693_v59, 4  ;;  %v1689_v49 = vperm.slane %v1683_v45, %v2264_v15  ;;  %1848 = vmatpush.msrb.mxu0 %v26_v38  ;;  %v39_v38 = vld [vmem:[%s2872_s3 + $0x18] sm:$0xff] }
 0x4dd   :  { %v1695_v50 = vsel %vm169_vm8, %v1694_v31, %v1675_v36  ;;  %v2063_v31 = vld [vmem:[%s2873_s4 + $0x4] ss:$0 sm:$0xff] }
 0x4de   :  { %v1713_v1 = vsel %vm169_vm8, %v1705_v29, %v1712_v46  ;;  %v1701_v27 = vperm.slane %v1695_v50, %v2264_v15  ;;  %v1708_v51 = vrot.slane %v1689_v49, 4  ;;  %v1710_v20 = vrot.slane %v1705_v29, 4  ;;  %v34_v15 = vld [vmem:[%s2871_s2 + $0x40] sm:$0xff]  ;;  %1849 = vmatpush.msrb.mxu0 %v25_v39 }
 0x4df   :  { %1734 = vrot.lane.b32.xlu2 %v1713_v1, %s2152_s18  ;;  %1766 = vmatpush.msrb.mxu3 %v34_v15  ;;  %v2064_v1 = vld [vmem:[%s2873_s4 + $0x5] ss:$0 sm:$0xff] }
 0x4e0   :  { %v1706_v52 = vrot.slane %v1701_v27, 4  ;;  %v1709_v54 = vsel %vm169_vm8, %v1701_v27, %v1708_v51  ;;  %v1711_v60 = vsel %vm169_vm8, %v1710_v20, %v1693_v59  ;;  %1850 = vmatpush.msrb.mxu0 %v24_v41 }
 0x4e1   :  { %1718 = vrot.lane.b32.xlu0 %v1709_v54, %s2153_s19  ;;  %1767 = vmatpush.msrb.mxu3 %v33_v47 }
 0x4e2   :  { %v1707_v55 = vsel %vm169_vm8, %v1706_v52, %v1689_v49  ;;  %vm1740_vm8 = vcmask 130048  }
 0x4e3   :  { %1768 = vmatpush.msrb.mxu3 %v32_v62 }
 0x4e9   :  { %1726 = vrot.lane.b32.xlu0 %v1711_v60, %s2151_s1 }
 0x527   :  { %v1725_v2 = vpop.permute.xlu2 %1724 }
 0x539   :  { %v1735_v58 = vpop.permute.xlu2 %1734 }
 0x540   :  { %v1733_v4 = vpop.permute.xlu1 %1732 }
 0x542   :  { %v1717_v48 = vpop.permute.xlu0 %1716 }
 0x543   :  { %v1738_v3 = vsel %vm893_vm9, %v1653_v11, %v1717_v48  ;;  %v2114_v11 = vld [vmem:[%s2869_s0 + $0x8] sm:$0xff] }
 0x544   :  { %v1741_v5 = vsel %vm1740_vm8, %v1738_v3, %v1725_v2  ;;  %v2065_v2 = vld [vmem:[%s2873_s4] ss:$0 sm:$0xff] }
 0x545   :  { %v1744_v0 = vsel %vm1743_vm3, %v1741_v5, %v1733_v4  ;;  %v51_v5 = vld [vmem:[%s2872_s3 + $0x78] sm:$0xff] }
 0x546   :  { %2018 = vmatmul.msk.f32.vlgmr.msrb.gmra.mxu3 %vm60_vm0, %v1744_v0  ;;  %1947 = vmatpush.msra.mxu1 %v51_v5 }
 0x553   :  { %v1719_v63 = vpop.permute.xlu0 %1718 }
 0x554   :  { %v1739_v12 = vsel %vm893_vm9, %v1707_v55, %v1719_v63  ;;  %v50_v63 = vld [vmem:[%s2872_s3 + $0x70] sm:$0xff] }
 0x555   :  { %1948 = vmatpush.msra.mxu1 %v50_v63 }
 0x55b   :  { %v1727_v53 = vpop.permute.xlu0 %1726 }
 0x55c   :  { %v1742_v57 = vsel %vm1740_vm8, %v1739_v12, %v1727_v53  ;;  %v49_v53 = vld [vmem:[%s2872_s3 + $0x68] sm:$0xff] }
 0x55d   :  { %v1745_v40 = vsel %vm1743_vm3, %v1742_v57, %v1735_v58  ;;  %1949 = vmatpush.msra.mxu1 %v49_v53  ;;  %v48_v57 = vld [vmem:[%s2872_s3 + $0x60] sm:$0xff] }
 0x55e   :  { %2019 = vmatmul.msk.f32.gmra.mxu3 %vm60_vm0, %v1745_v40 }
 0x55f   :  { %1950 = vmatpush.msra.mxu1 %v48_v57 }
 0x5c9   :  { %v1770_v21 = vpop.f32.mrf.mxu3 }
 0x5ca   :  { %v1771_v7 = vadd.f32 %v2062_v56, %v1770_v21  ;;  %v47_v21 = vld [vmem:[%s2872_s3 + $0x58] sm:$0xff] }
 0x5cb   :  { %1951 = vmatpush.msra.mxu1 %v47_v21 }
 0x5cc   :  { %v2750_v13 = vadd.f32 %v2113_v37, %v1771_v7 }
 0x5ce   :  { %v1778_v22 = vsel %vm60_vm0, %v2750_v13, 0.0 }
 0x5cf   :  { %1779 = vadd.xlane.f32.xlu1 %v1778_v22  ;;  %v46_v22 = vld [vmem:[%s2872_s3 + $0x50] sm:$0xff] }
 0x5d0   :  { %1952 = vmatpush.msra.mxu1 %v46_v22 }
 0x5e1   :  { %v1773_v8 = vpop.f32.mrf.mxu3 }
 0x5e2   :  { %v1774_v9 = vadd.f32 %v2062_v56, %v1773_v8 }
 0x5e4   :  { %v2757_v14 = vadd.f32 %v2114_v11, %v1774_v9  ;;  %v45_v11 = vld [vmem:[%s2872_s3 + $0x48] sm:$0xff] }
 0x5e5   :  { %1953 = vmatpush.msra.mxu1 %v45_v11 }
 0x5e6   :  { %v1781_v16 = vsel %vm60_vm0, %v2757_v14, 0.0 }
 0x5e7   :  { %1782 = vadd.xlane.f32.xlu0 %v1781_v16 }
 0x642   :  { %v1780_v17 = vpop.xlane.xlu1 %1779 }
 0x643   :  { %v1784_v23 = vmul.f32 %v1780_v17, %v2194_v10 }
 0x645   :  { %v1786_v18 = vsub.f32 %v2750_v13, %v1784_v23  ;;  %v44_v23 = vld [vmem:[%s2872_s3 + $0x40] sm:$0xff] }
 0x646   :  { %1954 = vmatpush.msra.mxu1 %v44_v23 }
 0x647   :  { %v1788_v30 = vmul.f32 %v1786_v18, %v1786_v18 }
 0x649   :  { %v1790_v25 = vsel %vm60_vm0, %v1788_v30, 0.0  ;;  %v43_v30 = vld [vmem:[%s2872_s3 + $0x38] sm:$0xff] }
 0x64a   :  { %1791 = vadd.xlane.f32.xlu2 %v1790_v25  ;;  %1955 = vmatpush.msra.mxu1 %v43_v30 }
 0x65a   :  { %v1783_v35 = vpop.xlane.xlu0 %1782 }
 0x65b   :  { %v1785_v19 = vmul.f32 %v1783_v35, %v2194_v10 }
 0x65d   :  { %v1787_v26 = vsub.f32 %v2757_v14, %v1785_v19  ;;  %v42_v19 = vld [vmem:[%s2872_s3 + $0x30] sm:$0xff] }
 0x65e   :  { %1956 = vmatpush.msra.mxu1 %v42_v19 }
 0x65f   :  { %v1789_v28 = vmul.f32 %v1787_v26, %v1787_v26 }
 0x661   :  { %v1793_v24 = vsel %vm60_vm0, %v1789_v28, 0.0 }
 0x662   :  { %1794 = vadd.xlane.f32.xlu1 %v1793_v24 }
 0x6bd   :  { %v1792_v32 = vpop.xlane.xlu2 %1791 }
 0x6be   :  { %v1796_v33 = vmul.f32 %v1792_v32, %v2194_v10  ;;  %v40_v32 = vld [vmem:[%s2872_s3 + $0x20] sm:$0xff] }
 0x6c0   :  { %v1798_v36 = vadd.f32 1e-05, %v1796_v33 }
 0x6c2   :  { %2105 = vrsqrt.f32 %v1798_v36  ;;  %vm1806_vm4 = vweird.f32 %v1798_v36 }
 0x6c8   :  { %v2106_v42 = vpop.eup %2105 }
 0x6c9   :  { %v1801_v43 = vmul.f32 %v2106_v42, %v1798_v36  ;;  %vm1807_vm9 = vweird.f32 %v2106_v42 }
 0x6ca   :  { %vm1808_vm5 = vmor %vm1806_vm4, %vm1807_vm9 }
 0x6cb   :  { %v1802_v44 = vmul.f32 %v2106_v42, %v1801_v43 }
 0x6cd   :  { %v1803_v59 = vmul.f32 0.5, %v1802_v44 }
 0x6cf   :  { %v1804_v6 = vsub.f32 1.5, %v1803_v59 }
 0x6d1   :  { %v1805_v45 = vmul.f32 %v2106_v42, %v1804_v6  ;;  %v37_v6 = vld [vmem:[%s2872_s3 + $0x8] sm:$0xff] }
 0x6d3   :  { %v1809_v29 = vsel %vm1808_vm5, %v2106_v42, %v1805_v45  ;;  %v38_v42 = vld [vmem:[%s2872_s3 + $0x10] sm:$0xff] }
 0x6d4   :  { %v1820_v49 = vmul.f32 %v1809_v29, %v1786_v18 }
 0x6d5   :  { %v1795_v46 = vpop.xlane.xlu1 %1794 }
 0x6d6   :  { %v1797_v50 = vmul.f32 %v1795_v46, %v2194_v10  ;;  %v1823_v27 = vmul.f32 %v2063_v31, %v1820_v49 }
 0x6d8   :  { %v1799_v51 = vadd.f32 1e-05, %v1797_v50  ;;  %v1826_v52 = vadd.f32 %v2064_v1, %v1823_v27 }
 0x6da   :  { %2107 = vrsqrt.f32 %v1799_v51  ;;  %2020 = vmatmul.msk.f32.vlgmr.msrb.gmra.mxu0 %vm60_vm0, %v1826_v52  ;;  %vm1816_vm7 = vweird.f32 %v1799_v51 }
 0x6e0   :  { %v2108_v54 = vpop.eup %2107 }
 0x6e1   :  { %v1811_v55 = vmul.f32 %v2108_v54, %v1799_v51  ;;  %vm1817_vm6 = vweird.f32 %v2108_v54 }
 0x6e2   :  { %vm1818_vm10 = vmor %vm1816_vm7, %vm1817_vm6 }
 0x6e3   :  { %v1812_v20 = vmul.f32 %v2108_v54, %v1811_v55 }
 0x6e5   :  { %v1813_v60 = vmul.f32 0.5, %v1812_v20 }
 0x6e7   :  { %v1814_v61 = vsub.f32 1.5, %v1813_v60 }
 0x6e9   :  { %v1815_v15 = vmul.f32 %v2108_v54, %v1814_v61 }
 0x6eb   :  { %v1819_v10 = vsel %vm1818_vm10, %v2108_v54, %v1815_v15 }
 0x6ec   :  { %v1821_v47 = vmul.f32 %v1819_v10, %v1787_v26  ;;  %v41_v26 = vld [vmem:[%s2872_s3 + $0x28] sm:$0xff] }
 0x6ed   :  { %1957 = vmatpush.msra.mxu1 %v41_v26 }
 0x6ee   :  { %v1824_v62 = vmul.f32 %v2063_v31, %v1821_v47  ;;  %v36_v31 = vld [vmem:[%s2872_s3] sm:$0xff] }
 0x6ef   :  { %1958 = vmatpush.msra.mxu1 %v40_v32 }
 0x6f0   :  { %v1827_v48 = vadd.f32 %v2064_v1, %v1824_v62 }
 0x6f1   :  { %1959 = vmatpush.msra.mxu1 %v39_v38 }
 0x6f2   :  { %2021 = vmatmul.msk.f32.gmra.mxu0 %vm60_vm0, %v1827_v48 }
 0x6f3   :  { %1960 = vmatpush.msra.mxu1 %v38_v42 }
 0x6f5   :  { %1961 = vmatpush.msra.mxu1 %v37_v6 }
 0x6f7   :  { %1962 = vmatpush.msra.mxu1 %v36_v31 }
 0x757   :  { %v1852_v3 = vpop.f32.mrf.mxu0 }
 0x758   :  { %v2792_v4 = vadd.f32 %v2065_v2, %v1852_v3 }
 0x75a   :  { %v2798_v0 = vmul.f32 0.70710677, %v2792_v4  ;;  %v1858_v22 = vmul.f32 0.5, %v2792_v4 }
 0x75c   :  { %v1862_v12 = vmul.f32 %v2798_v0, %v2798_v0 }
 0x75e   :  { %v1863_v58 = vmin.f32 %v1862_v12, 16.0 }
 0x760   :  { %v1864_v40 = vmul.f32 2.1237322e-06, %v1863_v58  ;;  %v1875_v56 = vmul.f32 3.8918573e-05, %v1863_v58 }
 0x762   :  { %v1865_v7 = vadd.f32 0.00028619796, %v1864_v40  ;;  %v1876_v37 = vadd.f32 0.001143296, %v1875_v56 }
 0x764   :  { %v1866_v8 = vmul.f32 %v1865_v7, %v1863_v58  ;;  %v1877_v9 = vmul.f32 %v1876_v37, %v1863_v58 }
 0x766   :  { %v1867_v16 = vadd.f32 0.0036580483, %v1866_v8  ;;  %v1878_v17 = vadd.f32 0.014752088, %v1877_v9 }
 0x768   :  { %v1879_v18 = vmul.f32 %v1878_v17, %v1863_v58  ;;  %v1868_v25 = vmul.f32 %v1867_v16, %v1863_v58 }
 0x76a   :  { %v1880_v35 = vadd.f32 0.112945676, %v1879_v18  ;;  %v1869_v33 = vadd.f32 0.05243302, %v1868_v25 }
 0x76c   :  { %v1881_v28 = vmul.f32 %v1880_v35, %v1863_v58  ;;  %v1870_v43 = vmul.f32 %v1869_v33, %v1863_v58 }
 0x76e   :  { %v1882_v34 = vadd.f32 0.4994258, %v1881_v28  ;;  %v1871_v29 = vadd.f32 0.18741608, %v1870_v43 }
 0x76f   :  { %v1855_v24 = vpop.f32.mrf.mxu0 }
 0x770   :  { %v2835_v36 = vadd.f32 %v2065_v2, %v1855_v24  ;;  %v1883_v39 = vmul.f32 %v1882_v34, %v1863_v58  ;;  %v1872_v51 = vmul.f32 %v1871_v29, %v1863_v58 }
 0x772   :  { %v2841_v41 = vmul.f32 0.70710677, %v2835_v36  ;;  %v1884_v44 = vadd.f32 1.0, %v1883_v39  ;;  %v1873_v61 = vadd.f32 1.1283791, %v1872_v51  ;;  %v1859_v39 = vmul.f32 0.5, %v2835_v36 }
 0x774   :  { %v1902_v59 = vmul.f32 %v2841_v41, %v2841_v41  ;;  %2109 = vrcp.f32 %v1884_v44  ;;  %v1896_v15 = vand.u32 2147483648, %v1884_v44  ;;  %v1894_v62 = vand.u32 2147483647, %v1884_v44 }
 0x775   :  { %vm1890_vm12 = vweird.f32 %v1884_v44  ;;  %v1874_v12 = vmul.f32 %v1873_v61, %v2798_v0 }
 0x776   :  { %v1903_v45 = vmin.f32 %v1902_v59, 16.0  ;;  %v1897_v5 = vor.u32 1.1754944e-38, %v1896_v15  ;;  %vm1895_vm14 = vcmp.eq.f32.partialorder %v1894_v62, 8.507059e+37 }
 0x778   :  { %v1904_v46 = vmul.f32 2.1237322e-06, %v1903_v45  ;;  %v1915_v49 = vmul.f32 3.8918573e-05, %v1903_v45 }
 0x77a   :  { %v1905_v50 = vadd.f32 0.00028619796, %v1904_v46  ;;  %v1916_v1 = vadd.f32 0.001143296, %v1915_v49  ;;  %v2110_v27 = vpop.eup %2109 }
 0x77b   :  { %v1886_v52 = vmul.f32 %v2110_v27, %v1884_v44  ;;  %vm1891_vm11 = vweird.f32 %v2110_v27  ;;  %v2066_v44 = vld [vmem:[%s2873_s4 + $0x7] ss:$0 sm:$0xff]  ;;  %s2155_s4 = smov 128  }
 0x77c   :  { %v1906_v54 = vmul.f32 %v1905_v50, %v1903_v45  ;;  %v1917_v55 = vmul.f32 %v1916_v1, %v1903_v45  ;;  %vm1892_vm13 = vmor %vm1890_vm12, %vm1891_vm11 }
 0x77d   :  { %v1887_v20 = vsub.f32 1.0, %v1886_v52 }
 0x77e   :  { %v1918_v60 = vadd.f32 0.014752088, %v1917_v55  ;;  %v1907_v10 = vadd.f32 0.0036580483, %v1906_v54 }
 0x77f   :  { %v1888_v47 = vmul.f32 %v2110_v27, %v1887_v20 }
 0x780   :  { %v1919_v48 = vmul.f32 %v1918_v60, %v1903_v45  ;;  %v1908_v63 = vmul.f32 %v1907_v10, %v1903_v45 }
 0x781   :  { %v1889_v2 = vadd.f32 %v2110_v27, %v1888_v47 }
 0x782   :  { %v1920_v3 = vadd.f32 0.112945676, %v1919_v48  ;;  %v1909_v21 = vadd.f32 0.05243302, %v1908_v63 }
 0x783   :  { %v1893_v53 = vsel %vm1892_vm13, %v2110_v27, %v1889_v2 }
 0x784   :  { %v1921_v58 = vmul.f32 %v1920_v3, %v1903_v45  ;;  %v1898_v57 = vsel %vm1895_vm14, %v1897_v5, %v1893_v53  ;;  %v1910_v11 = vmul.f32 %v1909_v21, %v1903_v45 }
 0x785   :  { %v1899_v40 = vmul.f32 %v1898_v57, %v1874_v12 }
 0x786   :  { %v1922_v56 = vadd.f32 0.4994258, %v1921_v58  ;;  %v1911_v17 = vadd.f32 0.18741608, %v1910_v11 }
 0x787   :  { %v2022_v7 = vclamps-f32 %v1899_v40, 1.0 }
 0x788   :  { %v1923_v37 = vmul.f32 %v1922_v56, %v1903_v45  ;;  %v1912_v0 = vmul.f32 %v1911_v17, %v1903_v45 }
 0x789   :  { %v1942_v8 = vadd.f32 1.0, %v2022_v7 }
 0x78a   :  { %v1924_v9 = vadd.f32 1.0, %v1923_v37  ;;  %v1913_v35 = vadd.f32 1.1283791, %v1912_v0 }
 0x78b   :  { %v1944_v16 = vmul.f32 %v1942_v8, %v1858_v22 }
 0x78c   :  { %2111 = vrcp.f32 %v1924_v9  ;;  %v1936_v25 = vand.u32 2147483648, %v1924_v9  ;;  %v1934_v26 = vand.u32 2147483647, %v1924_v9  ;;  %vm1930_vm1 = vweird.f32 %v1924_v9 }
 0x78d   :  { %1963 = vmatmul.f32.vlgmr.msra.gmra.mxu1 %v1944_v16  ;;  %v1914_v24 = vmul.f32 %v1913_v35, %v2841_v41 }
 0x78e   :  { %v1937_v4 = vor.u32 1.1754944e-38, %v1936_v25  ;;  %vm1935_vm8 = vcmp.eq.f32.partialorder %v1934_v26, 8.507059e+37 }
 0x792   :  { %v2112_v23 = vpop.eup %2111 }
 0x793   :  { %v1926_v18 = vmul.f32 %v2112_v23, %v1924_v9  ;;  %vm1931_vm15 = vweird.f32 %v2112_v23 }
 0x794   :  { %vm1932_vm2 = vmor %vm1930_vm1, %vm1931_vm15 }
 0x795   :  { %v1927_v30 = vsub.f32 1.0, %v1926_v18 }
 0x797   :  { %v1928_v19 = vmul.f32 %v2112_v23, %v1927_v30 }
 0x799   :  { %v1929_v28 = vadd.f32 %v2112_v23, %v1928_v19 }
 0x79b   :  { %v1933_v32 = vsel %vm1932_vm2, %v2112_v23, %v1929_v28 }
 0x79c   :  { %v1938_v33 = vsel %vm1935_vm8, %v1937_v4, %v1933_v32 }
 0x79d   :  { %v1939_v34 = vmul.f32 %v1938_v33, %v1914_v24 }
 0x79f   :  { %v2023_v38 = vclamps-f32 %v1939_v34, 1.0 }
 0x7a1   :  { %v1943_v42 = vadd.f32 1.0, %v2023_v38 }
 0x7a3   :  { %v1945_v43 = vmul.f32 %v1943_v42, %v1859_v39 }
 0x7a5   :  { %1966 = vmatmul.f32.gmra.mxu1 %v1945_v43 }
 0x80a   :  { %v1964_v59 = vpop.f32.mrf.mxu1 }
 0x80b   :  { %v1965_v6 = vadd.f32 %v2066_v44, %v1964_v59 }
 0x80d   :  { %v1970_v45 = vadd.f32 %v1965_v6, %v2750_v13 }
 0x80f   :  { %1972 = vst.msk [vmem:[#allocation2] sm:$0xff] %vm60_vm0, %v1970_v45 }
 0x822   :  { %v1967_v41 = vpop.f32.mrf.mxu1 }
 0x823   :  { %v1968_v36 = vadd.f32 %v2066_v44, %v1967_v41 }
 0x825   :  { %v1971_v31 = vadd.f32 %v1968_v36, %v2757_v14 }
 0x827   :  { %1973 = vst.msk [vmem:[#allocation2 + $0x8] sm:$0xff] %vm60_vm0, %v1971_v31 }
 0x828   :  { %1986 = dma.vmem_to_hbm [thread:$0]  %s1979_s6, 256, %s1981_s29, [#allocation3], %s2155_s4, %s2155_s4, %s2153_s19  }
 0x829   :  { %2139 = dma.done.wait [#allocation3], 256  }
 0x82a   :  { %2140 = vsyncadd [#allocation3], 4294967040 }
 0x82b   :  { %1991 = vsyncpa [#allocation3], 1 }

</bundles_post_ra>
